<compile_context>
chip_gen: v5e
topology: v5e:2x2
jax: 0.10.0
libtpu: 0.0.40
codegen_flags: <defaults>
</compile_context>

<pallas_src>
import functools

import jax
import jax.numpy as jnp
from jax.experimental import pallas as pl
from jax.experimental.pallas import tpu as pltpu

F32 = jnp.float32
BF16 = jnp.bfloat16
V_TH = 0.5      # firing_thres
TAU = 2.0


def _round_up(x, m):
    return ((x + m - 1) // m) * m


def _lif_step(v, cur):
    v_new = v + (cur - v) * (1.0 / TAU)
    spk = (v_new >= V_TH).astype(F32)
    return spk, v_new * (1.0 - spk)


def _choose_t_blk(T, n_pad, row_bytes, fixed_bytes,
                  budget_bytes=10 << 20, max_unroll=32):
    """Largest divisor of T (<= max_unroll) whose block fits the VMEM budget."""
    t_blk = 1
    for cand in range(1, min(T, max_unroll) + 1):
        if T % cand == 0 and fixed_bytes + cand * n_pad * row_bytes <= budget_bytes:
            t_blk = cand
    return t_blk, fixed_bytes + t_blk * n_pad * row_bytes


def _compiler_params(dim_sems, est_bytes):
    kw = dict(dimension_semantics=dim_sems)
    # Raise the scoped-VMEM limit only when the estimate might not fit the
    # per-generation default (16 MiB on v5e, 32 MiB on v6e/v7x).
    if est_bytes > (12 << 20):
        kw["vmem_limit_bytes"] = int(min(2 * est_bytes, 48 << 20))
    return pltpu.CompilerParams(**kw)


# ----------------------------------------------------------------------------
# Encoder kernel (per user k): fc1 (block matmul) -> LIF -> *gate
#                              -> fc_out (block matmul) -> LIF
# Layout: x [K, T, Npad, D] (time-major rows) ; outputs [K, T, Npad, H/2B].
# grid = (K, T // t_blk);  K parallel (independent users), T arbitrary (LIF).
# ----------------------------------------------------------------------------
def encoder_kernel(x_ref, w1_ref, w2_ref, gate_ref, ch_ref, com_ref,
                   v1_ref, v2_ref):
    @pl.when(pl.program_id(1) == 0)
    def _():
        v1_ref[...] = jnp.zeros_like(v1_ref)
        v2_ref[...] = jnp.zeros_like(v2_ref)

    _, TB, N, D = x_ref.shape
    rows = TB * N

    # fc1 carries no LIF dependence -> one MXU matmul for the whole time block.
    x = x_ref[0].reshape(rows, D)                                   # bf16
    cur1 = jnp.dot(x, w1_ref[0], preferred_element_type=F32)        # [rows, H]
    gate = gate_ref[...].astype(F32)                                # [1, H]

    v1 = v1_ref[...]
    ch_steps = []
    for tb in range(TB):                                            # LIF recurrence only
        spk, v1 = _lif_step(v1, cur1[tb * N:(tb + 1) * N])
        ch_steps.append(spk * gate)                                 # gated hidden spikes
    v1_ref[...] = v1
    ch_blk = jnp.concatenate(ch_steps, axis=0).astype(BF16)         # one dense store
    ch_ref[0] = ch_blk.reshape(TB, N, -1)

    # fc_out, batched over the block (input = gated spikes just computed).
    cur2 = jnp.dot(ch_blk, w2_ref[0], preferred_element_type=F32)   # [rows, 2B]
    v2 = v2_ref[...]
    com_steps = []
    for tb in range(TB):
        spk, v2 = _lif_step(v2, cur2[tb * N:(tb + 1) * N])
        com_steps.append(spk)                                       # transmitted spikes
    v2_ref[...] = v2
    com_ref[0] = jnp.concatenate(com_steps, axis=0).astype(BF16).reshape(TB, N, -1)


def run_encoders(x_ktnd, enc_fc1, enc_fc_out, gate_row, t_blk, est_bytes):
    K, T, Np, D = x_ktnd.shape
    H = enc_fc1.shape[-1]
    B2 = enc_fc_out.shape[-1]
    assert T % t_blk == 0

    grid_spec = pltpu.PrefetchScalarGridSpec(
        num_scalar_prefetch=0,
        grid=(K, T // t_blk),
        in_specs=[
            pl.BlockSpec((1, t_blk, Np, D), lambda k, t: (k, t, 0, 0)),
            pl.BlockSpec((1, D, H), lambda k, t: (k, 0, 0)),
            pl.BlockSpec((1, H, B2), lambda k, t: (k, 0, 0)),
            pl.BlockSpec((1, H), lambda k, t: (0, 0)),
        ],
        out_specs=[
            pl.BlockSpec((1, t_blk, Np, H), lambda k, t: (k, t, 0, 0)),
            pl.BlockSpec((1, t_blk, Np, B2), lambda k, t: (k, t, 0, 0)),
        ],
        scratch_shapes=[pltpu.VMEM((Np, H), F32),     # lif1 membrane
                        pltpu.VMEM((Np, B2), F32)],   # lif_out membrane
    )
    return pl.pallas_call(
        encoder_kernel,
        out_shape=(jax.ShapeDtypeStruct((K, T, Np, H), BF16),
                   jax.ShapeDtypeStruct((K, T, Np, B2), BF16)),
        grid_spec=grid_spec,
        compiler_params=_compiler_params(("parallel", "arbitrary"), est_bytes),
    )(x_ktnd, enc_fc1, enc_fc_out, gate_row)


# ----------------------------------------------------------------------------
# Fused decoder kernel:
#   sum_k com_k @ W_comb_k   (channel FIR folded into the conv Toeplitz weight)
#   -> LIF -> *conv_gate     (== Decoder_convolution_layer, gated & recorded)
#   -> fc1 matmul -> LIF -> *gate   (recorded de_spk)
#   -> fc_out matmul -> LIF -> spike accumulation; vote + 1/T at last block.
# grid = (T // t_blk,)
# ----------------------------------------------------------------------------
def decoder_kernel(com_ref, wcomb_ref, cgate_ref, w1_ref, gate_ref, w2_ref, vote_ref,
                   out_ref, conv_ref, de_ref,
                   vc_ref, v1_ref, v2_ref, acc_ref, *, inv_T):
    @pl.when(pl.program_id(0) == 0)
    def _():
        vc_ref[...] = jnp.zeros_like(vc_ref)
        v1_ref[...] = jnp.zeros_like(v1_ref)
        v2_ref[...] = jnp.zeros_like(v2_ref)
        acc_ref[...] = jnp.zeros_like(acc_ref)

    K, TB, N, B2 = com_ref.shape
    rows = TB * N

    # Channel + Conv1d(k=13, pad=6, no bias) folded into one matmul per user.
    curc = jnp.dot(com_ref[0].reshape(rows, B2), wcomb_ref[0],
                   preferred_element_type=F32)
    for k in range(1, K):
        curc = curc + jnp.dot(com_ref[k].reshape(rows, B2), wcomb_ref[k],
                              preferred_element_type=F32)
    cgate = cgate_ref[...].astype(F32)                              # [1, Cout*Lout]

    vc = vc_ref[...]
    conv_steps = []
    for tb in range(TB):
        spk, vc = _lif_step(vc, curc[tb * N:(tb + 1) * N])
        conv_steps.append(spk * cgate)                              # gated conv spikes
    vc_ref[...] = vc
    conv_blk = jnp.concatenate(conv_steps, axis=0).astype(BF16)
    conv_ref[...] = conv_blk.reshape(TB, N, -1)

    # decoder fc1 (batched over the block) -> LIF -> * gate
    cur1 = jnp.dot(conv_blk, w1_ref[...], preferred_element_type=F32)
    gate = gate_ref[...].astype(F32)
    v1 = v1_ref[...]
    de_steps = []
    for tb in range(TB):
        spk, v1 = _lif_step(v1, cur1[tb * N:(tb + 1) * N])
        de_steps.append(spk * gate)                                 # recorded de_spk
    v1_ref[...] = v1
    de_blk = jnp.concatenate(de_steps, axis=0).astype(BF16)
    de_ref[...] = de_blk.reshape(TB, N, -1)

    # decoder fc_out (batched) -> LIF; accumulate output spikes over time.
    cur2 = jnp.dot(de_blk, w2_ref[...], preferred_element_type=F32)
    v2 = v2_ref[...]
    acc = acc_ref[...]
    for tb in range(TB):
        spk, v2 = _lif_step(v2, cur2[tb * N:(tb + 1) * N])
        acc = acc + spk
    v2_ref[...] = v2
    acc_ref[...] = acc

    @pl.when(pl.program_id(0) == pl.num_programs(0) - 1)
    def _():
        # VotingLayer (AvgPool1d(10,10)) as one matmul + 1/T average (exact:
        # voting is linear).  Constant-index out block stays VMEM-resident.
        out_ref[...] = jnp.dot(acc, vote_ref[...],
                               preferred_element_type=F32) * inv_T


def run_decoder(com_rec, w_comb, cgate_row, dec_fc1, gate_row, dec_fc_out, vote_mat,
                t_blk, est_bytes, inv_T):
    K, T, Np, B2 = com_rec.shape
    Din = w_comb.shape[-1]
    H = dec_fc1.shape[-1]
    Ncls = dec_fc_out.shape[-1]
    Nvote = vote_mat.shape[-1]
    assert T % t_blk == 0

    kernel = functools.partial(decoder_kernel, inv_T=inv_T)
    grid_spec = pltpu.PrefetchScalarGridSpec(
        num_scalar_prefetch=0,
        grid=(T // t_blk,),
        in_specs=[
            pl.BlockSpec((K, t_blk, Np, B2), lambda t: (0, t, 0, 0)),
            pl.BlockSpec((K, B2, Din), lambda t: (0, 0, 0)),
            pl.BlockSpec((1, Din), lambda t: (0, 0)),
            pl.BlockSpec((Din, H), lambda t: (0, 0)),
            pl.BlockSpec((1, H), lambda t: (0, 0)),
            pl.BlockSpec((H, Ncls), lambda t: (0, 0)),
            pl.BlockSpec((Ncls, Nvote), lambda t: (0, 0)),
        ],
        out_specs=[
            pl.BlockSpec((Np, Nvote), lambda t: (0, 0)),
            pl.BlockSpec((t_blk, Np, Din), lambda t: (t, 0, 0)),
            pl.BlockSpec((t_blk, Np, H), lambda t: (t, 0, 0)),
        ],
        scratch_shapes=[pltpu.VMEM((Np, Din), F32),     # conv LIF membrane
                        pltpu.VMEM((Np, H), F32),       # fc1 LIF membrane
                        pltpu.VMEM((Np, Ncls), F32),    # fc_out LIF membrane
                        pltpu.VMEM((Np, Ncls), F32)],   # output-spike accumulator
    )
    return pl.pallas_call(
        kernel,
        out_shape=(jax.ShapeDtypeStruct((Np, Nvote), F32),
                   jax.ShapeDtypeStruct((T, Np, Din), BF16),
                   jax.ShapeDtypeStruct((T, Np, H), BF16)),
        grid_spec=grid_spec,
        compiler_params=_compiler_params(("arbitrary",), est_bytes),
    )(com_rec, w_comb, cgate_row, dec_fc1, gate_row, dec_fc_out, vote_mat)


# ----------------------------------------------------------------------------
# Weight prep (pure JAX, once per call).
# ----------------------------------------------------------------------------
def build_channel_toeplitz(h_taps, B):
    """Complex L-tap FIR channel as a real [2B, 2*Lout] block matrix per user."""
    # TODO(synk): the PyTorch h[k] is an arbitrary external callable; it is
    # modeled here as an L-tap complex FIR ("full" convolution) given by h_taps[k].
    K, L = h_taps.shape
    Lout = B + L - 1
    b = jnp.arange(B)[:, None]
    l = jnp.arange(Lout)[None, :]
    d = l - b
    valid = (d >= 0) & (d < L)
    taps = h_taps[:, jnp.clip(d, 0, L - 1)]                    # [K, B, Lout] complex
    M = jnp.where(valid[None, :, :], taps, 0.0)
    M_re = jnp.real(M).astype(F32)
    M_im = jnp.imag(M).astype(F32)
    # [x_re, x_im] @ [[M_re, M_im], [-M_im, M_re]] = [y_re, y_im]
    M_big = jnp.concatenate(
        [jnp.concatenate([M_re, M_im], axis=2),
         jnp.concatenate([-M_im, M_re], axis=2)], axis=1)      # [K, 2B, 2*Lout]
    return M_big, Lout


def build_conv_toeplitz(conv_w, Lout):
    """Conv1d(kernel=K, padding=(K-1)//2, no bias) as [Cin*Lin, Cout*Lout] matrix."""
    Cout, Cin, Ksz = conv_w.shape
    pad = (Ksz - 1) // 2
    li = jnp.arange(Lout)[:, None]               # input position
    lo = jnp.arange(Lout)[None, :]               # output position
    dk = li - lo + pad                           # kernel tap index
    valid = (dk >= 0) & (dk < Ksz)
    w_g = conv_w[:, :, jnp.clip(dk, 0, Ksz - 1)]            # [Cout, Cin, Lin, Lout]
    w_g = jnp.where(valid[None, None], w_g, 0.0)
    return jnp.transpose(w_g, (1, 2, 0, 3)).reshape(Cin * Lout, Cout * Lout).astype(F32)


# ----------------------------------------------------------------------------
# Full MU_SCBaseNet forward
# ----------------------------------------------------------------------------
def mu_scbasenet_forward(params, x_feat, h_taps, gate, conv_gate, t_blk=None):
    # x_feat: [N, K, T, D]  (use_feature=True; SemanticEncoder path not used)
    # TODO(synk): the use_feature=False SemanticEncoder conv stack is not implemented.
    N, K, T, D = x_feat.shape
    H = params['enc_fc1'].shape[-1]
    B2 = params['enc_fc_out'].shape[-1]
    B = B2 // 2
    Cout = params['conv_w'].shape[0]
    Ncls = params['dec_fc_out'].shape[-1]
    if t_blk is not None:
        assert T % t_blk == 0

    # Pad batch to a sublane multiple so per-timestep LIF slabs are dense/aligned.
    Np = max(8, _round_up(N, 8))
    if Np != N:
        x_feat = jnp.pad(x_feat, ((0, Np - N), (0, 0), (0, 0), (0, 0)))
    # [N,K,T,D] -> time-major [K,T,Np,D]; spikes/features are 0/1 -> bf16 exact.
    x_ktnd = jnp.transpose(x_feat, (1, 2, 0, 3)).astype(BF16)

    # Channel FIR folded into the conv Toeplitz weight: W_comb[k] [2B, Cout*Lout].
    M_big, Lout = build_channel_toeplitz(h_taps, B)
    w_toe = build_conv_toeplitz(params['conv_w'], Lout)
    Din = Cout * Lout
    w_comb = jnp.einsum('kbl,kld->kbd', M_big,
                        w_toe.reshape(K, 2 * Lout, Din)).astype(BF16)  # [K, 2B, Din]
    cgate_row = jnp.repeat(conv_gate.astype(BF16), Lout).reshape(1, Din)
    gate_row = gate.astype(BF16).reshape(1, H)

    idx = jnp.arange(Ncls)
    vote_mat = jnp.zeros((Ncls, Ncls // 10), F32).at[idx, idx // 10].set(0.1)

    enc_fc1 = params['enc_fc1'].astype(BF16)        # [K, D, H]
    enc_fc_out = params['enc_fc_out'].astype(BF16)  # [K, H, 2B]
    dec_fc1 = params['dec_fc1'].astype(BF16)        # [Din, H]
    dec_fc_out = params['dec_fc_out'].astype(BF16)  # [H, 110]

    # VMEM-budgeted time-block selection (rows = t_blk*Np; bigger blocks amortize
    # grid overhead and fill the MXU rows on v6e/v7x).
    enc_row = 2 * 2 * (D + H + B2) + 4 * (H + B2)
    enc_fix = 2 * 2 * (D * H + H * B2) + 4 * Np * (H + B2) + 4096
    dec_row = 2 * 2 * (K * B2 + Din + H) + 4 * (Din + H + Ncls)
    dec_fix = 2 * 2 * (K * B2 * Din + Din * H + H * Ncls) + 4 * Np * (Din + H + 2 * Ncls) + 4096
    if t_blk is None:
        t_blk_e, est_e = _choose_t_blk(T, Np, enc_row, enc_fix)
        t_blk_d, est_d = _choose_t_blk(T, Np, dec_row, dec_fix)
    else:
        t_blk_e, est_e = t_blk, enc_fix + t_blk * Np * enc_row
        t_blk_d, est_d = t_blk, dec_fix + t_blk * Np * dec_row

    # Encoders (K parallel) -> decoder consumes the com-spike slab directly.
    ch_rec, com_rec = run_encoders(x_ktnd, enc_fc1, enc_fc_out, gate_row,
                                   t_blk_e, est_e)
    out_pad, conv_rec, de_rec = run_decoder(com_rec, w_comb, cgate_row, dec_fc1,
                                            gate_row, dec_fc_out, vote_mat,
                                            t_blk_d, est_d, 1.0 / T)

    out = out_pad[:N]                                              # [N, 11] f32
    # spk_rec restored to the PyTorch layouts (one cheap layout pass; downstream
    # code could consume the time-major kernel outputs directly to skip it).
    sc_spk = jnp.transpose(ch_rec[:, :, :N], (0, 2, 1, 3))         # [K, N, T, H]
    ch_spk = jnp.transpose(com_rec[:, :, :N], (0, 2, 1, 3))        # [K, N, T, 2B]
    conv_spk = jnp.transpose(conv_rec[:, :N], (1, 0, 2)).reshape(N, T, Cout, Lout)
    de_spk = jnp.transpose(de_rec[:, :N], (1, 0, 2))               # [N, T, H]

    spk_rec = [sc_spk, ch_spk, conv_spk, de_spk]
    return out, spk_rec


if __name__ == "__main__":
    key = jax.random.PRNGKey(0)
    N, K, T = 2, 2, 8
    channels = 8
    D = channels * 4 * 4 // K          # encoder fc1 input dim = 64
    H = 32                             # hidden_num
    B = 16                             # block_length
    L = 4                              # channel taps
    Cout = 4                           # conv_out_channels
    Lout = B + L - 1                   # 19
    Din = Cout * Lout                  # 76

    keys = jax.random.split(key, 10)
    params = {
        'enc_fc1':    jax.random.uniform(keys[0], (K, D, H), F32, -1.0, 1.0) / jnp.sqrt(D * 1.0),
        'enc_fc_out': jax.random.uniform(keys[1], (K, H, 2 * B), F32, -1.0, 1.0) / jnp.sqrt(H * 1.0),
        'conv_w':     jax.random.uniform(keys[2], (Cout, 2 * K, 13), F32, -1.0, 1.0) / jnp.sqrt(2 * K * 13.0),
        'dec_fc1':    jax.random.uniform(keys[3], (Din, H), F32, -1.0, 1.0) / jnp.sqrt(Din * 1.0),
        'dec_fc_out': jax.random.uniform(keys[4], (H, 110), F32, -1.0, 1.0) / jnp.sqrt(H * 1.0),
    }
    x_feat = jax.random.bernoulli(keys[5], 0.5, (N, K, T, D)).astype(F32)
    h_re = jax.random.normal(keys[6], (K, L), F32) / jnp.sqrt(2.0 * L)
    h_im = jax.random.normal(keys[7], (K, L), F32) / jnp.sqrt(2.0 * L)
    h_taps = h_re + 1j * h_im
    gate = jax.random.bernoulli(keys[8], 0.8, (H,)).astype(F32)
    conv_gate = jax.random.bernoulli(keys[9], 0.8, (Cout,)).astype(F32)

    fwd = jax.jit(mu_scbasenet_forward)
    out, spk_rec = fwd(params, x_feat, h_taps, gate, conv_gate)
    out = jax.block_until_ready(out)
    for s in spk_rec:
        jax.block_until_ready(s)

    assert out.shape == (N, 11)
    assert spk_rec[0].shape == (K, N, T, H)
    assert spk_rec[1].shape == (K, N, T, 2 * B)
    assert spk_rec[2].shape == (N, T, Cout, Lout)
    assert spk_rec[3].shape == (N, T, H)
    assert bool(jnp.all(jnp.isfinite(out)))
    print("KERNEL_OK")
</pallas_src>

<mosaic_0001>
module attributes {stable_mosaic.version = 11 : i64} {
  func.func @encoder_kernel(%arg0: i32, %arg1: i32, %arg2: memref<1x8x8x64xbf16, #tpu.memory_space<vmem>>, %arg3: memref<1x64x32xbf16, #tpu.memory_space<vmem>>, %arg4: memref<1x32x32xbf16, #tpu.memory_space<vmem>>, %arg5: memref<1x32xbf16, #tpu.memory_space<vmem>>, %arg6: memref<1x8x8x32xbf16, #tpu.memory_space<vmem>>, %arg7: memref<1x8x8x32xbf16, #tpu.memory_space<vmem>>, %arg8: memref<8x32xf32, #tpu.memory_space<vmem>>, %arg9: memref<8x32xf32, #tpu.memory_space<vmem>>) attributes {dimension_semantics = [#tpu.dimension_semantics<parallel>, #tpu.dimension_semantics<arbitrary>], iteration_bounds = array<i64: 2, 1>, scalar_prefetch = 0 : i64, scratch_operands = 2 : i64, tpu.core_type = #tpu.core_type<tc>, window_params = [{transform_indices = @transform_0, window_bounds = array<i64: 1, 8, 8, 64>}, {transform_indices = @transform_1, window_bounds = array<i64: 1, 64, 32>}, {transform_indices = @transform_2, window_bounds = array<i64: 1, 32, 32>}, {pipeline_mode = #tpu.pipeline_mode<synchronous>, transform_indices = @transform_3, window_bounds = array<i64: 1, 32>}, {transform_indices = @transform_4, window_bounds = array<i64: 1, 8, 8, 32>}, {transform_indices = @transform_5, window_bounds = array<i64: 1, 8, 8, 32>}]} {
    %c0_i32 = arith.constant 0 : i32
    %0 = arith.cmpi eq, %arg1, %c0_i32 : i32
    %1 = arith.extui %0 : i1 to i32
    %c0_i32_0 = arith.constant 0 : i32
    %2 = arith.cmpi ne, %1, %c0_i32_0 : i32
    scf.if %2 {
      %cst_77 = arith.constant 0.000000e+00 : f32
      %238 = vector.broadcast %cst_77 : f32 to vector<8x32xf32>
      %c0_78 = arith.constant 0 : index
      %c0_79 = arith.constant 0 : index
      %239 = vector.load %arg8[%c0_78, %c0_79] : memref<8x32xf32, #tpu.memory_space<vmem>>, vector<8x32xf32>
      tpu.vector_store %arg8[%c0_78, %c0_79], %238 {strides = array<i32>} : memref<8x32xf32, #tpu.memory_space<vmem>>, vector<8x32xf32>,
      %cst_80 = arith.constant 0.000000e+00 : f32
      %240 = vector.broadcast %cst_80 : f32 to vector<8x32xf32>
      %c0_81 = arith.constant 0 : index
      %c0_82 = arith.constant 0 : index
      %241 = vector.load %arg9[%c0_81, %c0_82] : memref<8x32xf32, #tpu.memory_space<vmem>>, vector<8x32xf32>
      tpu.vector_store %arg9[%c0_81, %c0_82], %240 {strides = array<i32>} : memref<8x32xf32, #tpu.memory_space<vmem>>, vector<8x32xf32>,
    } else {
    }
    %c0 = arith.constant 0 : index
    %c0_1 = arith.constant 0 : index
    %c0_2 = arith.constant 0 : index
    %c0_3 = arith.constant 0 : index
    %3 = vector.load %arg2[%c0, %c0_1, %c0_2, %c0_3] : memref<1x8x8x64xbf16, #tpu.memory_space<vmem>>, vector<1x8x8x64xbf16>
    %4 = vector.shape_cast %3 : vector<1x8x8x64xbf16> to vector<8x8x64xbf16>
    %5 = vector.shape_cast %4 : vector<8x8x64xbf16> to vector<64x64xbf16>
    %c0_4 = arith.constant 0 : index
    %c0_5 = arith.constant 0 : index
    %c0_6 = arith.constant 0 : index
    %6 = vector.load %arg3[%c0_4, %c0_5, %c0_6] : memref<1x64x32xbf16, #tpu.memory_space<vmem>>, vector<1x64x32xbf16>
    %7 = vector.shape_cast %6 : vector<1x64x32xbf16> to vector<64x32xbf16>
    %cst = arith.constant dense<0.000000e+00> : vector<64x32xf32>
    %8 = tpu.matmul %5, %7, %cst {dimension_numbers = #tpu.dot_dimension_numbers<[1], [0], [0], [1], [0, 0, 1, 1], [], []>} : vector<64x64xbf16>, vector<64x32xbf16>, vector<64x32xf32> -> vector<64x32xf32>
    %c0_7 = arith.constant 0 : index
    %c0_8 = arith.constant 0 : index
    %9 = vector.load %arg5[%c0_7, %c0_8] : memref<1x32xbf16, #tpu.memory_space<vmem>>, vector<1x32xbf16>
    %10 = arith.extf %9 : vector<1x32xbf16> to vector<1x32xf32>
    %c0_9 = arith.constant 0 : index
    %c0_10 = arith.constant 0 : index
    %11 = vector.load %arg8[%c0_9, %c0_10] : memref<8x32xf32, #tpu.memory_space<vmem>>, vector<8x32xf32>
    %12 = vector.extract_strided_slice %8 {offsets = [0, 0], sizes = [8, 32], strides = [1, 1]} : vector<64x32xf32> to vector<8x32xf32>
    %13 = arith.subf %12, %11 : vector<8x32xf32>
    %cst_11 = arith.constant 5.000000e-01 : f32
    %14 = vector.broadcast %cst_11 : f32 to vector<8x32xf32>
    %15 = arith.mulf %13, %14 : vector<8x32xf32>
    %16 = arith.addf %11, %15 : vector<8x32xf32>
    %cst_12 = arith.constant 5.000000e-01 : f32
    %17 = vector.broadcast %cst_12 : f32 to vector<8x32xf32>
    %18 = arith.cmpf oge, %16, %17 : vector<8x32xf32>
    %19 = arith.extui %18 : vector<8x32xi1> to vector<8x32xi32>
    %20 = arith.sitofp %19 : vector<8x32xi32> to vector<8x32xf32>
    %cst_13 = arith.constant 1.000000e+00 : f32
    %21 = vector.broadcast %cst_13 : f32 to vector<8x32xf32>
    %22 = arith.subf %21, %20 : vector<8x32xf32>
    %23 = arith.mulf %16, %22 : vector<8x32xf32>
    %24 = vector.broadcast %10 : vector<1x32xf32> to vector<8x32xf32>
    %25 = arith.mulf %20, %24 : vector<8x32xf32>
    %26 = vector.extract_strided_slice %8 {offsets = [8, 0], sizes = [8, 32], strides = [1, 1]} : vector<64x32xf32> to vector<8x32xf32>
    %27 = arith.subf %26, %23 : vector<8x32xf32>
    %cst_14 = arith.constant 5.000000e-01 : f32
    %28 = vector.broadcast %cst_14 : f32 to vector<8x32xf32>
    %29 = arith.mulf %27, %28 : vector<8x32xf32>
    %30 = arith.addf %23, %29 : vector<8x32xf32>
    %cst_15 = arith.constant 5.000000e-01 : f32
    %31 = vector.broadcast %cst_15 : f32 to vector<8x32xf32>
    %32 = arith.cmpf oge, %30, %31 : vector<8x32xf32>
    %33 = arith.extui %32 : vector<8x32xi1> to vector<8x32xi32>
    %34 = arith.sitofp %33 : vector<8x32xi32> to vector<8x32xf32>
    %cst_16 = arith.constant 1.000000e+00 : f32
    %35 = vector.broadcast %cst_16 : f32 to vector<8x32xf32>
    %36 = arith.subf %35, %34 : vector<8x32xf32>
    %37 = arith.mulf %30, %36 : vector<8x32xf32>
    %38 = vector.broadcast %10 : vector<1x32xf32> to vector<8x32xf32>
    %39 = arith.mulf %34, %38 : vector<8x32xf32>
    %40 = vector.extract_strided_slice %8 {offsets = [16, 0], sizes = [8, 32], strides = [1, 1]} : vector<64x32xf32> to vector<8x32xf32>
    %41 = arith.subf %40, %37 : vector<8x32xf32>
    %cst_17 = arith.constant 5.000000e-01 : f32
    %42 = vector.broadcast %cst_17 : f32 to vector<8x32xf32>
    %43 = arith.mulf %41, %42 : vector<8x32xf32>
    %44 = arith.addf %37, %43 : vector<8x32xf32>
    %cst_18 = arith.constant 5.000000e-01 : f32
    %45 = vector.broadcast %cst_18 : f32 to vector<8x32xf32>
    %46 = arith.cmpf oge, %44, %45 : vector<8x32xf32>
    %47 = arith.extui %46 : vector<8x32xi1> to vector<8x32xi32>
    %48 = arith.sitofp %47 : vector<8x32xi32> to vector<8x32xf32>
    %cst_19 = arith.constant 1.000000e+00 : f32
    %49 = vector.broadcast %cst_19 : f32 to vector<8x32xf32>
    %50 = arith.subf %49, %48 : vector<8x32xf32>
    %51 = arith.mulf %44, %50 : vector<8x32xf32>
    %52 = vector.broadcast %10 : vector<1x32xf32> to vector<8x32xf32>
    %53 = arith.mulf %48, %52 : vector<8x32xf32>
    %54 = vector.extract_strided_slice %8 {offsets = [24, 0], sizes = [8, 32], strides = [1, 1]} : vector<64x32xf32> to vector<8x32xf32>
    %55 = arith.subf %54, %51 : vector<8x32xf32>
    %cst_20 = arith.constant 5.000000e-01 : f32
    %56 = vector.broadcast %cst_20 : f32 to vector<8x32xf32>
    %57 = arith.mulf %55, %56 : vector<8x32xf32>
    %58 = arith.addf %51, %57 : vector<8x32xf32>
    %cst_21 = arith.constant 5.000000e-01 : f32
    %59 = vector.broadcast %cst_21 : f32 to vector<8x32xf32>
    %60 = arith.cmpf oge, %58, %59 : vector<8x32xf32>
    %61 = arith.extui %60 : vector<8x32xi1> to vector<8x32xi32>
    %62 = arith.sitofp %61 : vector<8x32xi32> to vector<8x32xf32>
    %cst_22 = arith.constant 1.000000e+00 : f32
    %63 = vector.broadcast %cst_22 : f32 to vector<8x32xf32>
    %64 = arith.subf %63, %62 : vector<8x32xf32>
    %65 = arith.mulf %58, %64 : vector<8x32xf32>
    %66 = vector.broadcast %10 : vector<1x32xf32> to vector<8x32xf32>
    %67 = arith.mulf %62, %66 : vector<8x32xf32>
    %68 = vector.extract_strided_slice %8 {offsets = [32, 0], sizes = [8, 32], strides = [1, 1]} : vector<64x32xf32> to vector<8x32xf32>
    %69 = arith.subf %68, %65 : vector<8x32xf32>
    %cst_23 = arith.constant 5.000000e-01 : f32
    %70 = vector.broadcast %cst_23 : f32 to vector<8x32xf32>
    %71 = arith.mulf %69, %70 : vector<8x32xf32>
    %72 = arith.addf %65, %71 : vector<8x32xf32>
    %cst_24 = arith.constant 5.000000e-01 : f32
    %73 = vector.broadcast %cst_24 : f32 to vector<8x32xf32>
    %74 = arith.cmpf oge, %72, %73 : vector<8x32xf32>
    %75 = arith.extui %74 : vector<8x32xi1> to vector<8x32xi32>
    %76 = arith.sitofp %75 : vector<8x32xi32> to vector<8x32xf32>
    %cst_25 = arith.constant 1.000000e+00 : f32
    %77 = vector.broadcast %cst_25 : f32 to vector<8x32xf32>
    %78 = arith.subf %77, %76 : vector<8x32xf32>
    %79 = arith.mulf %72, %78 : vector<8x32xf32>
    %80 = vector.broadcast %10 : vector<1x32xf32> to vector<8x32xf32>
    %81 = arith.mulf %76, %80 : vector<8x32xf32>
    %82 = vector.extract_strided_slice %8 {offsets = [40, 0], sizes = [8, 32], strides = [1, 1]} : vector<64x32xf32> to vector<8x32xf32>
    %83 = arith.subf %82, %79 : vector<8x32xf32>
    %cst_26 = arith.constant 5.000000e-01 : f32
    %84 = vector.broadcast %cst_26 : f32 to vector<8x32xf32>
    %85 = arith.mulf %83, %84 : vector<8x32xf32>
    %86 = arith.addf %79, %85 : vector<8x32xf32>
    %cst_27 = arith.constant 5.000000e-01 : f32
    %87 = vector.broadcast %cst_27 : f32 to vector<8x32xf32>
    %88 = arith.cmpf oge, %86, %87 : vector<8x32xf32>
    %89 = arith.extui %88 : vector<8x32xi1> to vector<8x32xi32>
    %90 = arith.sitofp %89 : vector<8x32xi32> to vector<8x32xf32>
    %cst_28 = arith.constant 1.000000e+00 : f32
    %91 = vector.broadcast %cst_28 : f32 to vector<8x32xf32>
    %92 = arith.subf %91, %90 : vector<8x32xf32>
    %93 = arith.mulf %86, %92 : vector<8x32xf32>
    %94 = vector.broadcast %10 : vector<1x32xf32> to vector<8x32xf32>
    %95 = arith.mulf %90, %94 : vector<8x32xf32>
    %96 = vector.extract_strided_slice %8 {offsets = [48, 0], sizes = [8, 32], strides = [1, 1]} : vector<64x32xf32> to vector<8x32xf32>
    %97 = arith.subf %96, %93 : vector<8x32xf32>
    %cst_29 = arith.constant 5.000000e-01 : f32
    %98 = vector.broadcast %cst_29 : f32 to vector<8x32xf32>
    %99 = arith.mulf %97, %98 : vector<8x32xf32>
    %100 = arith.addf %93, %99 : vector<8x32xf32>
    %cst_30 = arith.constant 5.000000e-01 : f32
    %101 = vector.broadcast %cst_30 : f32 to vector<8x32xf32>
    %102 = arith.cmpf oge, %100, %101 : vector<8x32xf32>
    %103 = arith.extui %102 : vector<8x32xi1> to vector<8x32xi32>
    %104 = arith.sitofp %103 : vector<8x32xi32> to vector<8x32xf32>
    %cst_31 = arith.constant 1.000000e+00 : f32
    %105 = vector.broadcast %cst_31 : f32 to vector<8x32xf32>
    %106 = arith.subf %105, %104 : vector<8x32xf32>
    %107 = arith.mulf %100, %106 : vector<8x32xf32>
    %108 = vector.broadcast %10 : vector<1x32xf32> to vector<8x32xf32>
    %109 = arith.mulf %104, %108 : vector<8x32xf32>
    %110 = vector.extract_strided_slice %8 {offsets = [56, 0], sizes = [8, 32], strides = [1, 1]} : vector<64x32xf32> to vector<8x32xf32>
    %111 = arith.subf %110, %107 : vector<8x32xf32>
    %cst_32 = arith.constant 5.000000e-01 : f32
    %112 = vector.broadcast %cst_32 : f32 to vector<8x32xf32>
    %113 = arith.mulf %111, %112 : vector<8x32xf32>
    %114 = arith.addf %107, %113 : vector<8x32xf32>
    %cst_33 = arith.constant 5.000000e-01 : f32
    %115 = vector.broadcast %cst_33 : f32 to vector<8x32xf32>
    %116 = arith.cmpf oge, %114, %115 : vector<8x32xf32>
    %117 = arith.extui %116 : vector<8x32xi1> to vector<8x32xi32>
    %118 = arith.sitofp %117 : vector<8x32xi32> to vector<8x32xf32>
    %cst_34 = arith.constant 1.000000e+00 : f32
    %119 = vector.broadcast %cst_34 : f32 to vector<8x32xf32>
    %120 = arith.subf %119, %118 : vector<8x32xf32>
    %121 = arith.mulf %114, %120 : vector<8x32xf32>
    %122 = vector.broadcast %10 : vector<1x32xf32> to vector<8x32xf32>
    %123 = arith.mulf %118, %122 : vector<8x32xf32>
    %c0_35 = arith.constant 0 : index
    %c0_36 = arith.constant 0 : index
    %124 = vector.load %arg8[%c0_35, %c0_36] : memref<8x32xf32, #tpu.memory_space<vmem>>, vector<8x32xf32>
    tpu.vector_store %arg8[%c0_35, %c0_36], %121 {strides = array<i32>} : memref<8x32xf32, #tpu.memory_space<vmem>>, vector<8x32xf32>,
    %125 = tpu.concatenate %25, %39, %53, %67, %81, %95, %109, %123 in 0 : vector<8x32xf32>, vector<8x32xf32>, vector<8x32xf32>, vector<8x32xf32>, vector<8x32xf32>, vector<8x32xf32>, vector<8x32xf32>, vector<8x32xf32> -> vector<64x32xf32>
    %126 = arith.truncf %125 : vector<64x32xf32> to vector<64x32xbf16>
    %127 = vector.shape_cast %126 : vector<64x32xbf16> to vector<8x8x32xbf16>
    %c0_37 = arith.constant 0 : index
    %c0_38 = arith.constant 0 : index
    %c0_39 = arith.constant 0 : index
    %c0_40 = arith.constant 0 : index
    %128 = vector.load %arg6[%c0_37, %c0_38, %c0_39, %c0_40] : memref<1x8x8x32xbf16, #tpu.memory_space<vmem>>, vector<1x8x8x32xbf16>
    %129 = vector.shape_cast %128 : vector<1x8x8x32xbf16> to vector<8x8x32xbf16>
    %130 = vector.shape_cast %127 : vector<8x8x32xbf16> to vector<1x8x8x32xbf16>
    tpu.vector_store %arg6[%c0_37, %c0_38, %c0_39, %c0_40], %130 {strides = array<i32>} : memref<1x8x8x32xbf16, #tpu.memory_space<vmem>>, vector<1x8x8x32xbf16>,
    %c0_41 = arith.constant 0 : index
    %c0_42 = arith.constant 0 : index
    %c0_43 = arith.constant 0 : index
    %131 = vector.load %arg4[%c0_41, %c0_42, %c0_43] : memref<1x32x32xbf16, #tpu.memory_space<vmem>>, vector<1x32x32xbf16>
    %132 = vector.shape_cast %131 : vector<1x32x32xbf16> to vector<32x32xbf16>
    %cst_44 = arith.constant dense<0.000000e+00> : vector<64x32xf32>
    %133 = tpu.matmul %126, %132, %cst_44 {dimension_numbers = #tpu.dot_dimension_numbers<[1], [0], [0], [1], [0, 0, 1, 1], [], []>} : vector<64x32xbf16>, vector<32x32xbf16>, vector<64x32xf32> -> vector<64x32xf32>
    %c0_45 = arith.constant 0 : index
    %c0_46 = arith.constant 0 : index
    %134 = vector.load %arg9[%c0_45, %c0_46] : memref<8x32xf32, #tpu.memory_space<vmem>>, vector<8x32xf32>
    %135 = vector.extract_strided_slice %133 {offsets = [0, 0], sizes = [8, 32], strides = [1, 1]} : vector<64x32xf32> to vector<8x32xf32>
    %136 = arith.subf %135, %134 : vector<8x32xf32>
    %cst_47 = arith.constant 5.000000e-01 : f32
    %137 = vector.broadcast %cst_47 : f32 to vector<8x32xf32>
    %138 = arith.mulf %136, %137 : vector<8x32xf32>
    %139 = arith.addf %134, %138 : vector<8x32xf32>
    %cst_48 = arith.constant 5.000000e-01 : f32
    %140 = vector.broadcast %cst_48 : f32 to vector<8x32xf32>
    %141 = arith.cmpf oge, %139, %140 : vector<8x32xf32>
    %142 = arith.extui %141 : vector<8x32xi1> to vector<8x32xi32>
    %143 = arith.sitofp %142 : vector<8x32xi32> to vector<8x32xf32>
    %cst_49 = arith.constant 1.000000e+00 : f32
    %144 = vector.broadcast %cst_49 : f32 to vector<8x32xf32>
    %145 = arith.subf %144, %143 : vector<8x32xf32>
    %146 = arith.mulf %139, %145 : vector<8x32xf32>
    %147 = vector.extract_strided_slice %133 {offsets = [8, 0], sizes = [8, 32], strides = [1, 1]} : vector<64x32xf32> to vector<8x32xf32>
    %148 = arith.subf %147, %146 : vector<8x32xf32>
    %cst_50 = arith.constant 5.000000e-01 : f32
    %149 = vector.broadcast %cst_50 : f32 to vector<8x32xf32>
    %150 = arith.mulf %148, %149 : vector<8x32xf32>
    %151 = arith.addf %146, %150 : vector<8x32xf32>
    %cst_51 = arith.constant 5.000000e-01 : f32
    %152 = vector.broadcast %cst_51 : f32 to vector<8x32xf32>
    %153 = arith.cmpf oge, %151, %152 : vector<8x32xf32>
    %154 = arith.extui %153 : vector<8x32xi1> to vector<8x32xi32>
    %155 = arith.sitofp %154 : vector<8x32xi32> to vector<8x32xf32>
    %cst_52 = arith.constant 1.000000e+00 : f32
    %156 = vector.broadcast %cst_52 : f32 to vector<8x32xf32>
    %157 = arith.subf %156, %155 : vector<8x32xf32>
    %158 = arith.mulf %151, %157 : vector<8x32xf32>
    %159 = vector.extract_strided_slice %133 {offsets = [16, 0], sizes = [8, 32], strides = [1, 1]} : vector<64x32xf32> to vector<8x32xf32>
    %160 = arith.subf %159, %158 : vector<8x32xf32>
    %cst_53 = arith.constant 5.000000e-01 : f32
    %161 = vector.broadcast %cst_53 : f32 to vector<8x32xf32>
    %162 = arith.mulf %160, %161 : vector<8x32xf32>
    %163 = arith.addf %158, %162 : vector<8x32xf32>
    %cst_54 = arith.constant 5.000000e-01 : f32
    %164 = vector.broadcast %cst_54 : f32 to vector<8x32xf32>
    %165 = arith.cmpf oge, %163, %164 : vector<8x32xf32>
    %166 = arith.extui %165 : vector<8x32xi1> to vector<8x32xi32>
    %167 = arith.sitofp %166 : vector<8x32xi32> to vector<8x32xf32>
    %cst_55 = arith.constant 1.000000e+00 : f32
    %168 = vector.broadcast %cst_55 : f32 to vector<8x32xf32>
    %169 = arith.subf %168, %167 : vector<8x32xf32>
    %170 = arith.mulf %163, %169 : vector<8x32xf32>
    %171 = vector.extract_strided_slice %133 {offsets = [24, 0], sizes = [8, 32], strides = [1, 1]} : vector<64x32xf32> to vector<8x32xf32>
    %172 = arith.subf %171, %170 : vector<8x32xf32>
    %cst_56 = arith.constant 5.000000e-01 : f32
    %173 = vector.broadcast %cst_56 : f32 to vector<8x32xf32>
    %174 = arith.mulf %172, %173 : vector<8x32xf32>
    %175 = arith.addf %170, %174 : vector<8x32xf32>
    %cst_57 = arith.constant 5.000000e-01 : f32
    %176 = vector.broadcast %cst_57 : f32 to vector<8x32xf32>
    %177 = arith.cmpf oge, %175, %176 : vector<8x32xf32>
    %178 = arith.extui %177 : vector<8x32xi1> to vector<8x32xi32>
    %179 = arith.sitofp %178 : vector<8x32xi32> to vector<8x32xf32>
    %cst_58 = arith.constant 1.000000e+00 : f32
    %180 = vector.broadcast %cst_58 : f32 to vector<8x32xf32>
    %181 = arith.subf %180, %179 : vector<8x32xf32>
    %182 = arith.mulf %175, %181 : vector<8x32xf32>
    %183 = vector.extract_strided_slice %133 {offsets = [32, 0], sizes = [8, 32], strides = [1, 1]} : vector<64x32xf32> to vector<8x32xf32>
    %184 = arith.subf %183, %182 : vector<8x32xf32>
    %cst_59 = arith.constant 5.000000e-01 : f32
    %185 = vector.broadcast %cst_59 : f32 to vector<8x32xf32>
    %186 = arith.mulf %184, %185 : vector<8x32xf32>
    %187 = arith.addf %182, %186 : vector<8x32xf32>
    %cst_60 = arith.constant 5.000000e-01 : f32
    %188 = vector.broadcast %cst_60 : f32 to vector<8x32xf32>
    %189 = arith.cmpf oge, %187, %188 : vector<8x32xf32>
    %190 = arith.extui %189 : vector<8x32xi1> to vector<8x32xi32>
    %191 = arith.sitofp %190 : vector<8x32xi32> to vector<8x32xf32>
    %cst_61 = arith.constant 1.000000e+00 : f32
    %192 = vector.broadcast %cst_61 : f32 to vector<8x32xf32>
    %193 = arith.subf %192, %191 : vector<8x32xf32>
    %194 = arith.mulf %187, %193 : vector<8x32xf32>
    %195 = vector.extract_strided_slice %133 {offsets = [40, 0], sizes = [8, 32], strides = [1, 1]} : vector<64x32xf32> to vector<8x32xf32>
    %196 = arith.subf %195, %194 : vector<8x32xf32>
    %cst_62 = arith.constant 5.000000e-01 : f32
    %197 = vector.broadcast %cst_62 : f32 to vector<8x32xf32>
    %198 = arith.mulf %196, %197 : vector<8x32xf32>
    %199 = arith.addf %194, %198 : vector<8x32xf32>
    %cst_63 = arith.constant 5.000000e-01 : f32
    %200 = vector.broadcast %cst_63 : f32 to vector<8x32xf32>
    %201 = arith.cmpf oge, %199, %200 : vector<8x32xf32>
    %202 = arith.extui %201 : vector<8x32xi1> to vector<8x32xi32>
    %203 = arith.sitofp %202 : vector<8x32xi32> to vector<8x32xf32>
    %cst_64 = arith.constant 1.000000e+00 : f32
    %204 = vector.broadcast %cst_64 : f32 to vector<8x32xf32>
    %205 = arith.subf %204, %203 : vector<8x32xf32>
    %206 = arith.mulf %199, %205 : vector<8x32xf32>
    %207 = vector.extract_strided_slice %133 {offsets = [48, 0], sizes = [8, 32], strides = [1, 1]} : vector<64x32xf32> to vector<8x32xf32>
    %208 = arith.subf %207, %206 : vector<8x32xf32>
    %cst_65 = arith.constant 5.000000e-01 : f32
    %209 = vector.broadcast %cst_65 : f32 to vector<8x32xf32>
    %210 = arith.mulf %208, %209 : vector<8x32xf32>
    %211 = arith.addf %206, %210 : vector<8x32xf32>
    %cst_66 = arith.constant 5.000000e-01 : f32
    %212 = vector.broadcast %cst_66 : f32 to vector<8x32xf32>
    %213 = arith.cmpf oge, %211, %212 : vector<8x32xf32>
    %214 = arith.extui %213 : vector<8x32xi1> to vector<8x32xi32>
    %215 = arith.sitofp %214 : vector<8x32xi32> to vector<8x32xf32>
    %cst_67 = arith.constant 1.000000e+00 : f32
    %216 = vector.broadcast %cst_67 : f32 to vector<8x32xf32>
    %217 = arith.subf %216, %215 : vector<8x32xf32>
    %218 = arith.mulf %211, %217 : vector<8x32xf32>
    %219 = vector.extract_strided_slice %133 {offsets = [56, 0], sizes = [8, 32], strides = [1, 1]} : vector<64x32xf32> to vector<8x32xf32>
    %220 = arith.subf %219, %218 : vector<8x32xf32>
    %cst_68 = arith.constant 5.000000e-01 : f32
    %221 = vector.broadcast %cst_68 : f32 to vector<8x32xf32>
    %222 = arith.mulf %220, %221 : vector<8x32xf32>
    %223 = arith.addf %218, %222 : vector<8x32xf32>
    %cst_69 = arith.constant 5.000000e-01 : f32
    %224 = vector.broadcast %cst_69 : f32 to vector<8x32xf32>
    %225 = arith.cmpf oge, %223, %224 : vector<8x32xf32>
    %226 = arith.extui %225 : vector<8x32xi1> to vector<8x32xi32>
    %227 = arith.sitofp %226 : vector<8x32xi32> to vector<8x32xf32>
    %cst_70 = arith.constant 1.000000e+00 : f32
    %228 = vector.broadcast %cst_70 : f32 to vector<8x32xf32>
    %229 = arith.subf %228, %227 : vector<8x32xf32>
    %230 = arith.mulf %223, %229 : vector<8x32xf32>
    %c0_71 = arith.constant 0 : index
    %c0_72 = arith.constant 0 : index
    %231 = vector.load %arg9[%c0_71, %c0_72] : memref<8x32xf32, #tpu.memory_space<vmem>>, vector<8x32xf32>
    tpu.vector_store %arg9[%c0_71, %c0_72], %230 {strides = array<i32>} : memref<8x32xf32, #tpu.memory_space<vmem>>, vector<8x32xf32>,
    %232 = tpu.concatenate %143, %155, %167, %179, %191, %203, %215, %227 in 0 : vector<8x32xf32>, vector<8x32xf32>, vector<8x32xf32>, vector<8x32xf32>, vector<8x32xf32>, vector<8x32xf32>, vector<8x32xf32>, vector<8x32xf32> -> vector<64x32xf32>
    %233 = arith.truncf %232 : vector<64x32xf32> to vector<64x32xbf16>
    %234 = vector.shape_cast %233 : vector<64x32xbf16> to vector<8x8x32xbf16>
    %c0_73 = arith.constant 0 : index
    %c0_74 = arith.constant 0 : index
    %c0_75 = arith.constant 0 : index
    %c0_76 = arith.constant 0 : index
    %235 = vector.load %arg7[%c0_73, %c0_74, %c0_75, %c0_76] : memref<1x8x8x32xbf16, #tpu.memory_space<vmem>>, vector<1x8x8x32xbf16>
    %236 = vector.shape_cast %235 : vector<1x8x8x32xbf16> to vector<8x8x32xbf16>
    %237 = vector.shape_cast %234 : vector<8x8x32xbf16> to vector<1x8x8x32xbf16>
    tpu.vector_store %arg7[%c0_73, %c0_74, %c0_75, %c0_76], %237 {strides = array<i32>} : memref<1x8x8x32xbf16, #tpu.memory_space<vmem>>, vector<1x8x8x32xbf16>,
    return
  }
  func.func @transform_0(%arg0: i32, %arg1: i32) -> (i32, i32, i32, i32) {
    %c0_i32 = arith.constant 0 : i32
    %c0_i32_0 = arith.constant 0 : i32
    %c0_i32_1 = arith.constant 0 : i32
    return %arg0, %arg1, %c0_i32, %c0_i32_0 : i32, i32, i32, i32
  }
  func.func @transform_1(%arg0: i32, %arg1: i32) -> (i32, i32, i32) {
    %c0_i32 = arith.constant 0 : i32
    %c0_i32_0 = arith.constant 0 : i32
    %c0_i32_1 = arith.constant 0 : i32
    return %arg0, %c0_i32, %c0_i32_0 : i32, i32, i32
  }
  func.func @transform_2(%arg0: i32, %arg1: i32) -> (i32, i32, i32) {
    %c0_i32 = arith.constant 0 : i32
    %c0_i32_0 = arith.constant 0 : i32
    %c0_i32_1 = arith.constant 0 : i32
    return %arg0, %c0_i32, %c0_i32_0 : i32, i32, i32
  }
  func.func @transform_3(%arg0: i32, %arg1: i32) -> (i32, i32) {
    %c0_i32 = arith.constant 0 : i32
    %c0_i32_0 = arith.constant 0 : i32
    %c0_i32_1 = arith.constant 0 : i32
    return %c0_i32, %c0_i32_0 : i32, i32
  }
  func.func @transform_4(%arg0: i32, %arg1: i32) -> (i32, i32, i32, i32) {
    %c0_i32 = arith.constant 0 : i32
    %c0_i32_0 = arith.constant 0 : i32
    %c0_i32_1 = arith.constant 0 : i32
    return %arg0, %arg1, %c0_i32, %c0_i32_0 : i32, i32, i32, i32
  }
  func.func @transform_5(%arg0: i32, %arg1: i32) -> (i32, i32, i32, i32) {
    %c0_i32 = arith.constant 0 : i32
    %c0_i32_0 = arith.constant 0 : i32
    %c0_i32_1 = arith.constant 0 : i32
    return %arg0, %arg1, %c0_i32, %c0_i32_0 : i32, i32, i32, i32
  }
}

module attributes {stable_mosaic.version = 11 : i64} {
  func.func @decoder_kernel(%arg0: i32, %arg1: memref<2x8x8x32xbf16, #tpu.memory_space<vmem>>, %arg2: memref<2x32x76xbf16, #tpu.memory_space<vmem>>, %arg3: memref<1x76xbf16, #tpu.memory_space<vmem>>, %arg4: memref<76x32xbf16, #tpu.memory_space<vmem>>, %arg5: memref<1x32xbf16, #tpu.memory_space<vmem>>, %arg6: memref<32x110xbf16, #tpu.memory_space<vmem>>, %arg7: memref<110x11xf32, #tpu.memory_space<vmem>>, %arg8: memref<8x11xf32, #tpu.memory_space<vmem>>, %arg9: memref<8x8x76xbf16, #tpu.memory_space<vmem>>, %arg10: memref<8x8x32xbf16, #tpu.memory_space<vmem>>, %arg11: memref<8x76xf32, #tpu.memory_space<vmem>>, %arg12: memref<8x32xf32, #tpu.memory_space<vmem>>, %arg13: memref<8x110xf32, #tpu.memory_space<vmem>>, %arg14: memref<8x110xf32, #tpu.memory_space<vmem>>) attributes {dimension_semantics = [#tpu.dimension_semantics<arbitrary>], iteration_bounds = array<i64: 1>, scalar_prefetch = 0 : i64, scratch_operands = 4 : i64, tpu.core_type = #tpu.core_type<tc>, window_params = [{transform_indices = @transform_0, window_bounds = array<i64: 2, 8, 8, 32>}, {pipeline_mode = #tpu.pipeline_mode<synchronous>, transform_indices = @transform_1, window_bounds = array<i64: 2, 32, 76>}, {pipeline_mode = #tpu.pipeline_mode<synchronous>, transform_indices = @transform_2, window_bounds = array<i64: 1, 76>}, {pipeline_mode = #tpu.pipeline_mode<synchronous>, transform_indices = @transform_3, window_bounds = array<i64: 76, 32>}, {pipeline_mode = #tpu.pipeline_mode<synchronous>, transform_indices = @transform_4, window_bounds = array<i64: 1, 32>}, {pipeline_mode = #tpu.pipeline_mode<synchronous>, transform_indices = @transform_5, window_bounds = array<i64: 32, 110>}, {pipeline_mode = #tpu.pipeline_mode<synchronous>, transform_indices = @transform_6, window_bounds = array<i64: 110, 11>}, {pipeline_mode = #tpu.pipeline_mode<synchronous>, transform_indices = @transform_7, window_bounds = array<i64: 8, 11>}, {transform_indices = @transform_8, window_bounds = array<i64: 8, 8, 76>}, {transform_indices = @transform_9, window_bounds = array<i64: 8, 8, 32>}]} {
    %c0_i32 = arith.constant 0 : i32
    %0 = arith.cmpi eq, %arg0, %c0_i32 : i32
    %1 = arith.extui %0 : i1 to i32
    %c0_i32_0 = arith.constant 0 : i32
    %2 = arith.cmpi ne, %1, %c0_i32_0 : i32
    scf.if %2 {
      %cst_120 = arith.constant 0.000000e+00 : f32
      %371 = vector.broadcast %cst_120 : f32 to vector<8x76xf32>
      %c0_121 = arith.constant 0 : index
      %c0_122 = arith.constant 0 : index
      %372 = vector.load %arg11[%c0_121, %c0_122] : memref<8x76xf32, #tpu.memory_space<vmem>>, vector<8x76xf32>
      tpu.vector_store %arg11[%c0_121, %c0_122], %371 {strides = array<i32>} : memref<8x76xf32, #tpu.memory_space<vmem>>, vector<8x76xf32>,
      %cst_123 = arith.constant 0.000000e+00 : f32
      %373 = vector.broadcast %cst_123 : f32 to vector<8x32xf32>
      %c0_124 = arith.constant 0 : index
      %c0_125 = arith.constant 0 : index
      %374 = vector.load %arg12[%c0_124, %c0_125] : memref<8x32xf32, #tpu.memory_space<vmem>>, vector<8x32xf32>
      tpu.vector_store %arg12[%c0_124, %c0_125], %373 {strides = array<i32>} : memref<8x32xf32, #tpu.memory_space<vmem>>, vector<8x32xf32>,
      %cst_126 = arith.constant 0.000000e+00 : f32
      %375 = vector.broadcast %cst_126 : f32 to vector<8x110xf32>
      %c0_127 = arith.constant 0 : index
      %c0_128 = arith.constant 0 : index
      %376 = vector.load %arg13[%c0_127, %c0_128] : memref<8x110xf32, #tpu.memory_space<vmem>>, vector<8x110xf32>
      tpu.vector_store %arg13[%c0_127, %c0_128], %375 {strides = array<i32>} : memref<8x110xf32, #tpu.memory_space<vmem>>, vector<8x110xf32>,
      %cst_129 = arith.constant 0.000000e+00 : f32
      %377 = vector.broadcast %cst_129 : f32 to vector<8x110xf32>
      %c0_130 = arith.constant 0 : index
      %c0_131 = arith.constant 0 : index
      %378 = vector.load %arg14[%c0_130, %c0_131] : memref<8x110xf32, #tpu.memory_space<vmem>>, vector<8x110xf32>
      tpu.vector_store %arg14[%c0_130, %c0_131], %377 {strides = array<i32>} : memref<8x110xf32, #tpu.memory_space<vmem>>, vector<8x110xf32>,
    } else {
    }
    %c0 = arith.constant 0 : index
    %c0_1 = arith.constant 0 : index
    %c0_2 = arith.constant 0 : index
    %c0_3 = arith.constant 0 : index
    %3 = vector.load %arg1[%c0, %c0_1, %c0_2, %c0_3] : memref<2x8x8x32xbf16, #tpu.memory_space<vmem>>, vector<1x8x8x32xbf16>
    %4 = vector.shape_cast %3 : vector<1x8x8x32xbf16> to vector<8x8x32xbf16>
    %5 = vector.shape_cast %4 : vector<8x8x32xbf16> to vector<64x32xbf16>
    %c0_4 = arith.constant 0 : index
    %c0_5 = arith.constant 0 : index
    %c0_6 = arith.constant 0 : index
    %6 = vector.load %arg2[%c0_4, %c0_5, %c0_6] : memref<2x32x76xbf16, #tpu.memory_space<vmem>>, vector<1x32x76xbf16>
    %7 = vector.shape_cast %6 : vector<1x32x76xbf16> to vector<32x76xbf16>
    %cst = arith.constant dense<0.000000e+00> : vector<64x76xf32>
    %8 = tpu.matmul %5, %7, %cst {dimension_numbers = #tpu.dot_dimension_numbers<[1], [0], [0], [1], [0, 0, 1, 1], [], []>} : vector<64x32xbf16>, vector<32x76xbf16>, vector<64x76xf32> -> vector<64x76xf32>
    %c1 = arith.constant 1 : index
    %c0_7 = arith.constant 0 : index
    %c0_8 = arith.constant 0 : index
    %c0_9 = arith.constant 0 : index
    %9 = vector.load %arg1[%c1, %c0_7, %c0_8, %c0_9] : memref<2x8x8x32xbf16, #tpu.memory_space<vmem>>, vector<1x8x8x32xbf16>
    %10 = vector.shape_cast %9 : vector<1x8x8x32xbf16> to vector<8x8x32xbf16>
    %11 = vector.shape_cast %10 : vector<8x8x32xbf16> to vector<64x32xbf16>
    %c1_10 = arith.constant 1 : index
    %c0_11 = arith.constant 0 : index
    %c0_12 = arith.constant 0 : index
    %12 = vector.load %arg2[%c1_10, %c0_11, %c0_12] : memref<2x32x76xbf16, #tpu.memory_space<vmem>>, vector<1x32x76xbf16>
    %13 = vector.shape_cast %12 : vector<1x32x76xbf16> to vector<32x76xbf16>
    %cst_13 = arith.constant dense<0.000000e+00> : vector<64x76xf32>
    %14 = tpu.matmul %11, %13, %cst_13 {dimension_numbers = #tpu.dot_dimension_numbers<[1], [0], [0], [1], [0, 0, 1, 1], [], []>} : vector<64x32xbf16>, vector<32x76xbf16>, vector<64x76xf32> -> vector<64x76xf32>
    %15 = arith.addf %8, %14 : vector<64x76xf32>
    %c0_14 = arith.constant 0 : index
    %c0_15 = arith.constant 0 : index
    %16 = vector.load %arg3[%c0_14, %c0_15] : memref<1x76xbf16, #tpu.memory_space<vmem>>, vector<1x76xbf16>
    %17 = arith.extf %16 : vector<1x76xbf16> to vector<1x76xf32>
    %c0_16 = arith.constant 0 : index
    %c0_17 = arith.constant 0 : index
    %18 = vector.load %arg11[%c0_16, %c0_17] : memref<8x76xf32, #tpu.memory_space<vmem>>, vector<8x76xf32>
    %19 = vector.extract_strided_slice %15 {offsets = [0, 0], sizes = [8, 76], strides = [1, 1]} : vector<64x76xf32> to vector<8x76xf32>
    %20 = arith.subf %19, %18 : vector<8x76xf32>
    %cst_18 = arith.constant 5.000000e-01 : f32
    %21 = vector.broadcast %cst_18 : f32 to vector<8x76xf32>
    %22 = arith.mulf %20, %21 : vector<8x76xf32>
    %23 = arith.addf %18, %22 : vector<8x76xf32>
    %cst_19 = arith.constant 5.000000e-01 : f32
    %24 = vector.broadcast %cst_19 : f32 to vector<8x76xf32>
    %25 = arith.cmpf oge, %23, %24 : vector<8x76xf32>
    %26 = arith.extui %25 : vector<8x76xi1> to vector<8x76xi32>
    %27 = arith.sitofp %26 : vector<8x76xi32> to vector<8x76xf32>
    %cst_20 = arith.constant 1.000000e+00 : f32
    %28 = vector.broadcast %cst_20 : f32 to vector<8x76xf32>
    %29 = arith.subf %28, %27 : vector<8x76xf32>
    %30 = arith.mulf %23, %29 : vector<8x76xf32>
    %31 = vector.broadcast %17 : vector<1x76xf32> to vector<8x76xf32>
    %32 = arith.mulf %27, %31 : vector<8x76xf32>
    %33 = vector.extract_strided_slice %15 {offsets = [8, 0], sizes = [8, 76], strides = [1, 1]} : vector<64x76xf32> to vector<8x76xf32>
    %34 = arith.subf %33, %30 : vector<8x76xf32>
    %cst_21 = arith.constant 5.000000e-01 : f32
    %35 = vector.broadcast %cst_21 : f32 to vector<8x76xf32>
    %36 = arith.mulf %34, %35 : vector<8x76xf32>
    %37 = arith.addf %30, %36 : vector<8x76xf32>
    %cst_22 = arith.constant 5.000000e-01 : f32
    %38 = vector.broadcast %cst_22 : f32 to vector<8x76xf32>
    %39 = arith.cmpf oge, %37, %38 : vector<8x76xf32>
    %40 = arith.extui %39 : vector<8x76xi1> to vector<8x76xi32>
    %41 = arith.sitofp %40 : vector<8x76xi32> to vector<8x76xf32>
    %cst_23 = arith.constant 1.000000e+00 : f32
    %42 = vector.broadcast %cst_23 : f32 to vector<8x76xf32>
    %43 = arith.subf %42, %41 : vector<8x76xf32>
    %44 = arith.mulf %37, %43 : vector<8x76xf32>
    %45 = vector.broadcast %17 : vector<1x76xf32> to vector<8x76xf32>
    %46 = arith.mulf %41, %45 : vector<8x76xf32>
    %47 = vector.extract_strided_slice %15 {offsets = [16, 0], sizes = [8, 76], strides = [1, 1]} : vector<64x76xf32> to vector<8x76xf32>
    %48 = arith.subf %47, %44 : vector<8x76xf32>
    %cst_24 = arith.constant 5.000000e-01 : f32
    %49 = vector.broadcast %cst_24 : f32 to vector<8x76xf32>
    %50 = arith.mulf %48, %49 : vector<8x76xf32>
    %51 = arith.addf %44, %50 : vector<8x76xf32>
    %cst_25 = arith.constant 5.000000e-01 : f32
    %52 = vector.broadcast %cst_25 : f32 to vector<8x76xf32>
    %53 = arith.cmpf oge, %51, %52 : vector<8x76xf32>
    %54 = arith.extui %53 : vector<8x76xi1> to vector<8x76xi32>
    %55 = arith.sitofp %54 : vector<8x76xi32> to vector<8x76xf32>
    %cst_26 = arith.constant 1.000000e+00 : f32
    %56 = vector.broadcast %cst_26 : f32 to vector<8x76xf32>
    %57 = arith.subf %56, %55 : vector<8x76xf32>
    %58 = arith.mulf %51, %57 : vector<8x76xf32>
    %59 = vector.broadcast %17 : vector<1x76xf32> to vector<8x76xf32>
    %60 = arith.mulf %55, %59 : vector<8x76xf32>
    %61 = vector.extract_strided_slice %15 {offsets = [24, 0], sizes = [8, 76], strides = [1, 1]} : vector<64x76xf32> to vector<8x76xf32>
    %62 = arith.subf %61, %58 : vector<8x76xf32>
    %cst_27 = arith.constant 5.000000e-01 : f32
    %63 = vector.broadcast %cst_27 : f32 to vector<8x76xf32>
    %64 = arith.mulf %62, %63 : vector<8x76xf32>
    %65 = arith.addf %58, %64 : vector<8x76xf32>
    %cst_28 = arith.constant 5.000000e-01 : f32
    %66 = vector.broadcast %cst_28 : f32 to vector<8x76xf32>
    %67 = arith.cmpf oge, %65, %66 : vector<8x76xf32>
    %68 = arith.extui %67 : vector<8x76xi1> to vector<8x76xi32>
    %69 = arith.sitofp %68 : vector<8x76xi32> to vector<8x76xf32>
    %cst_29 = arith.constant 1.000000e+00 : f32
    %70 = vector.broadcast %cst_29 : f32 to vector<8x76xf32>
    %71 = arith.subf %70, %69 : vector<8x76xf32>
    %72 = arith.mulf %65, %71 : vector<8x76xf32>
    %73 = vector.broadcast %17 : vector<1x76xf32> to vector<8x76xf32>
    %74 = arith.mulf %69, %73 : vector<8x76xf32>
    %75 = vector.extract_strided_slice %15 {offsets = [32, 0], sizes = [8, 76], strides = [1, 1]} : vector<64x76xf32> to vector<8x76xf32>
    %76 = arith.subf %75, %72 : vector<8x76xf32>
    %cst_30 = arith.constant 5.000000e-01 : f32
    %77 = vector.broadcast %cst_30 : f32 to vector<8x76xf32>
    %78 = arith.mulf %76, %77 : vector<8x76xf32>
    %79 = arith.addf %72, %78 : vector<8x76xf32>
    %cst_31 = arith.constant 5.000000e-01 : f32
    %80 = vector.broadcast %cst_31 : f32 to vector<8x76xf32>
    %81 = arith.cmpf oge, %79, %80 : vector<8x76xf32>
    %82 = arith.extui %81 : vector<8x76xi1> to vector<8x76xi32>
    %83 = arith.sitofp %82 : vector<8x76xi32> to vector<8x76xf32>
    %cst_32 = arith.constant 1.000000e+00 : f32
    %84 = vector.broadcast %cst_32 : f32 to vector<8x76xf32>
    %85 = arith.subf %84, %83 : vector<8x76xf32>
    %86 = arith.mulf %79, %85 : vector<8x76xf32>
    %87 = vector.broadcast %17 : vector<1x76xf32> to vector<8x76xf32>
    %88 = arith.mulf %83, %87 : vector<8x76xf32>
    %89 = vector.extract_strided_slice %15 {offsets = [40, 0], sizes = [8, 76], strides = [1, 1]} : vector<64x76xf32> to vector<8x76xf32>
    %90 = arith.subf %89, %86 : vector<8x76xf32>
    %cst_33 = arith.constant 5.000000e-01 : f32
    %91 = vector.broadcast %cst_33 : f32 to vector<8x76xf32>
    %92 = arith.mulf %90, %91 : vector<8x76xf32>
    %93 = arith.addf %86, %92 : vector<8x76xf32>
    %cst_34 = arith.constant 5.000000e-01 : f32
    %94 = vector.broadcast %cst_34 : f32 to vector<8x76xf32>
    %95 = arith.cmpf oge, %93, %94 : vector<8x76xf32>
    %96 = arith.extui %95 : vector<8x76xi1> to vector<8x76xi32>
    %97 = arith.sitofp %96 : vector<8x76xi32> to vector<8x76xf32>
    %cst_35 = arith.constant 1.000000e+00 : f32
    %98 = vector.broadcast %cst_35 : f32 to vector<8x76xf32>
    %99 = arith.subf %98, %97 : vector<8x76xf32>
    %100 = arith.mulf %93, %99 : vector<8x76xf32>
    %101 = vector.broadcast %17 : vector<1x76xf32> to vector<8x76xf32>
    %102 = arith.mulf %97, %101 : vector<8x76xf32>
    %103 = vector.extract_strided_slice %15 {offsets = [48, 0], sizes = [8, 76], strides = [1, 1]} : vector<64x76xf32> to vector<8x76xf32>
    %104 = arith.subf %103, %100 : vector<8x76xf32>
    %cst_36 = arith.constant 5.000000e-01 : f32
    %105 = vector.broadcast %cst_36 : f32 to vector<8x76xf32>
    %106 = arith.mulf %104, %105 : vector<8x76xf32>
    %107 = arith.addf %100, %106 : vector<8x76xf32>
    %cst_37 = arith.constant 5.000000e-01 : f32
    %108 = vector.broadcast %cst_37 : f32 to vector<8x76xf32>
    %109 = arith.cmpf oge, %107, %108 : vector<8x76xf32>
    %110 = arith.extui %109 : vector<8x76xi1> to vector<8x76xi32>
    %111 = arith.sitofp %110 : vector<8x76xi32> to vector<8x76xf32>
    %cst_38 = arith.constant 1.000000e+00 : f32
    %112 = vector.broadcast %cst_38 : f32 to vector<8x76xf32>
    %113 = arith.subf %112, %111 : vector<8x76xf32>
    %114 = arith.mulf %107, %113 : vector<8x76xf32>
    %115 = vector.broadcast %17 : vector<1x76xf32> to vector<8x76xf32>
    %116 = arith.mulf %111, %115 : vector<8x76xf32>
    %117 = vector.extract_strided_slice %15 {offsets = [56, 0], sizes = [8, 76], strides = [1, 1]} : vector<64x76xf32> to vector<8x76xf32>
    %118 = arith.subf %117, %114 : vector<8x76xf32>
    %cst_39 = arith.constant 5.000000e-01 : f32
    %119 = vector.broadcast %cst_39 : f32 to vector<8x76xf32>
    %120 = arith.mulf %118, %119 : vector<8x76xf32>
    %121 = arith.addf %114, %120 : vector<8x76xf32>
    %cst_40 = arith.constant 5.000000e-01 : f32
    %122 = vector.broadcast %cst_40 : f32 to vector<8x76xf32>
    %123 = arith.cmpf oge, %121, %122 : vector<8x76xf32>
    %124 = arith.extui %123 : vector<8x76xi1> to vector<8x76xi32>
    %125 = arith.sitofp %124 : vector<8x76xi32> to vector<8x76xf32>
    %cst_41 = arith.constant 1.000000e+00 : f32
    %126 = vector.broadcast %cst_41 : f32 to vector<8x76xf32>
    %127 = arith.subf %126, %125 : vector<8x76xf32>
    %128 = arith.mulf %121, %127 : vector<8x76xf32>
    %129 = vector.broadcast %17 : vector<1x76xf32> to vector<8x76xf32>
    %130 = arith.mulf %125, %129 : vector<8x76xf32>
    %c0_42 = arith.constant 0 : index
    %c0_43 = arith.constant 0 : index
    %131 = vector.load %arg11[%c0_42, %c0_43] : memref<8x76xf32, #tpu.memory_space<vmem>>, vector<8x76xf32>
    tpu.vector_store %arg11[%c0_42, %c0_43], %128 {strides = array<i32>} : memref<8x76xf32, #tpu.memory_space<vmem>>, vector<8x76xf32>,
    %132 = tpu.concatenate %32, %46, %60, %74, %88, %102, %116, %130 in 0 : vector<8x76xf32>, vector<8x76xf32>, vector<8x76xf32>, vector<8x76xf32>, vector<8x76xf32>, vector<8x76xf32>, vector<8x76xf32>, vector<8x76xf32> -> vector<64x76xf32>
    %133 = arith.truncf %132 : vector<64x76xf32> to vector<64x76xbf16>
    %134 = vector.shape_cast %133 : vector<64x76xbf16> to vector<8x8x76xbf16>
    %c0_44 = arith.constant 0 : index
    %c0_45 = arith.constant 0 : index
    %c0_46 = arith.constant 0 : index
    %135 = vector.load %arg9[%c0_44, %c0_45, %c0_46] : memref<8x8x76xbf16, #tpu.memory_space<vmem>>, vector<8x8x76xbf16>
    tpu.vector_store %arg9[%c0_44, %c0_45, %c0_46], %134 {strides = array<i32>} : memref<8x8x76xbf16, #tpu.memory_space<vmem>>, vector<8x8x76xbf16>,
    %c0_47 = arith.constant 0 : index
    %c0_48 = arith.constant 0 : index
    %136 = vector.load %arg4[%c0_47, %c0_48] : memref<76x32xbf16, #tpu.memory_space<vmem>>, vector<76x32xbf16>
    %cst_49 = arith.constant dense<0.000000e+00> : vector<64x32xf32>
    %137 = tpu.matmul %133, %136, %cst_49 {dimension_numbers = #tpu.dot_dimension_numbers<[1], [0], [0], [1], [0, 0, 1, 1], [], []>} : vector<64x76xbf16>, vector<76x32xbf16>, vector<64x32xf32> -> vector<64x32xf32>
    %c0_50 = arith.constant 0 : index
    %c0_51 = arith.constant 0 : index
    %138 = vector.load %arg5[%c0_50, %c0_51] : memref<1x32xbf16, #tpu.memory_space<vmem>>, vector<1x32xbf16>
    %139 = arith.extf %138 : vector<1x32xbf16> to vector<1x32xf32>
    %c0_52 = arith.constant 0 : index
    %c0_53 = arith.constant 0 : index
    %140 = vector.load %arg12[%c0_52, %c0_53] : memref<8x32xf32, #tpu.memory_space<vmem>>, vector<8x32xf32>
    %141 = vector.extract_strided_slice %137 {offsets = [0, 0], sizes = [8, 32], strides = [1, 1]} : vector<64x32xf32> to vector<8x32xf32>
    %142 = arith.subf %141, %140 : vector<8x32xf32>
    %cst_54 = arith.constant 5.000000e-01 : f32
    %143 = vector.broadcast %cst_54 : f32 to vector<8x32xf32>
    %144 = arith.mulf %142, %143 : vector<8x32xf32>
    %145 = arith.addf %140, %144 : vector<8x32xf32>
    %cst_55 = arith.constant 5.000000e-01 : f32
    %146 = vector.broadcast %cst_55 : f32 to vector<8x32xf32>
    %147 = arith.cmpf oge, %145, %146 : vector<8x32xf32>
    %148 = arith.extui %147 : vector<8x32xi1> to vector<8x32xi32>
    %149 = arith.sitofp %148 : vector<8x32xi32> to vector<8x32xf32>
    %cst_56 = arith.constant 1.000000e+00 : f32
    %150 = vector.broadcast %cst_56 : f32 to vector<8x32xf32>
    %151 = arith.subf %150, %149 : vector<8x32xf32>
    %152 = arith.mulf %145, %151 : vector<8x32xf32>
    %153 = vector.broadcast %139 : vector<1x32xf32> to vector<8x32xf32>
    %154 = arith.mulf %149, %153 : vector<8x32xf32>
    %155 = vector.extract_strided_slice %137 {offsets = [8, 0], sizes = [8, 32], strides = [1, 1]} : vector<64x32xf32> to vector<8x32xf32>
    %156 = arith.subf %155, %152 : vector<8x32xf32>
    %cst_57 = arith.constant 5.000000e-01 : f32
    %157 = vector.broadcast %cst_57 : f32 to vector<8x32xf32>
    %158 = arith.mulf %156, %157 : vector<8x32xf32>
    %159 = arith.addf %152, %158 : vector<8x32xf32>
    %cst_58 = arith.constant 5.000000e-01 : f32
    %160 = vector.broadcast %cst_58 : f32 to vector<8x32xf32>
    %161 = arith.cmpf oge, %159, %160 : vector<8x32xf32>
    %162 = arith.extui %161 : vector<8x32xi1> to vector<8x32xi32>
    %163 = arith.sitofp %162 : vector<8x32xi32> to vector<8x32xf32>
    %cst_59 = arith.constant 1.000000e+00 : f32
    %164 = vector.broadcast %cst_59 : f32 to vector<8x32xf32>
    %165 = arith.subf %164, %163 : vector<8x32xf32>
    %166 = arith.mulf %159, %165 : vector<8x32xf32>
    %167 = vector.broadcast %139 : vector<1x32xf32> to vector<8x32xf32>
    %168 = arith.mulf %163, %167 : vector<8x32xf32>
    %169 = vector.extract_strided_slice %137 {offsets = [16, 0], sizes = [8, 32], strides = [1, 1]} : vector<64x32xf32> to vector<8x32xf32>
    %170 = arith.subf %169, %166 : vector<8x32xf32>
    %cst_60 = arith.constant 5.000000e-01 : f32
    %171 = vector.broadcast %cst_60 : f32 to vector<8x32xf32>
    %172 = arith.mulf %170, %171 : vector<8x32xf32>
    %173 = arith.addf %166, %172 : vector<8x32xf32>
    %cst_61 = arith.constant 5.000000e-01 : f32
    %174 = vector.broadcast %cst_61 : f32 to vector<8x32xf32>
    %175 = arith.cmpf oge, %173, %174 : vector<8x32xf32>
    %176 = arith.extui %175 : vector<8x32xi1> to vector<8x32xi32>
    %177 = arith.sitofp %176 : vector<8x32xi32> to vector<8x32xf32>
    %cst_62 = arith.constant 1.000000e+00 : f32
    %178 = vector.broadcast %cst_62 : f32 to vector<8x32xf32>
    %179 = arith.subf %178, %177 : vector<8x32xf32>
    %180 = arith.mulf %173, %179 : vector<8x32xf32>
    %181 = vector.broadcast %139 : vector<1x32xf32> to vector<8x32xf32>
    %182 = arith.mulf %177, %181 : vector<8x32xf32>
    %183 = vector.extract_strided_slice %137 {offsets = [24, 0], sizes = [8, 32], strides = [1, 1]} : vector<64x32xf32> to vector<8x32xf32>
    %184 = arith.subf %183, %180 : vector<8x32xf32>
    %cst_63 = arith.constant 5.000000e-01 : f32
    %185 = vector.broadcast %cst_63 : f32 to vector<8x32xf32>
    %186 = arith.mulf %184, %185 : vector<8x32xf32>
    %187 = arith.addf %180, %186 : vector<8x32xf32>
    %cst_64 = arith.constant 5.000000e-01 : f32
    %188 = vector.broadcast %cst_64 : f32 to vector<8x32xf32>
    %189 = arith.cmpf oge, %187, %188 : vector<8x32xf32>
    %190 = arith.extui %189 : vector<8x32xi1> to vector<8x32xi32>
    %191 = arith.sitofp %190 : vector<8x32xi32> to vector<8x32xf32>
    %cst_65 = arith.constant 1.000000e+00 : f32
    %192 = vector.broadcast %cst_65 : f32 to vector<8x32xf32>
    %193 = arith.subf %192, %191 : vector<8x32xf32>
    %194 = arith.mulf %187, %193 : vector<8x32xf32>
    %195 = vector.broadcast %139 : vector<1x32xf32> to vector<8x32xf32>
    %196 = arith.mulf %191, %195 : vector<8x32xf32>
    %197 = vector.extract_strided_slice %137 {offsets = [32, 0], sizes = [8, 32], strides = [1, 1]} : vector<64x32xf32> to vector<8x32xf32>
    %198 = arith.subf %197, %194 : vector<8x32xf32>
    %cst_66 = arith.constant 5.000000e-01 : f32
    %199 = vector.broadcast %cst_66 : f32 to vector<8x32xf32>
    %200 = arith.mulf %198, %199 : vector<8x32xf32>
    %201 = arith.addf %194, %200 : vector<8x32xf32>
    %cst_67 = arith.constant 5.000000e-01 : f32
    %202 = vector.broadcast %cst_67 : f32 to vector<8x32xf32>
    %203 = arith.cmpf oge, %201, %202 : vector<8x32xf32>
    %204 = arith.extui %203 : vector<8x32xi1> to vector<8x32xi32>
    %205 = arith.sitofp %204 : vector<8x32xi32> to vector<8x32xf32>
    %cst_68 = arith.constant 1.000000e+00 : f32
    %206 = vector.broadcast %cst_68 : f32 to vector<8x32xf32>
    %207 = arith.subf %206, %205 : vector<8x32xf32>
    %208 = arith.mulf %201, %207 : vector<8x32xf32>
    %209 = vector.broadcast %139 : vector<1x32xf32> to vector<8x32xf32>
    %210 = arith.mulf %205, %209 : vector<8x32xf32>
    %211 = vector.extract_strided_slice %137 {offsets = [40, 0], sizes = [8, 32], strides = [1, 1]} : vector<64x32xf32> to vector<8x32xf32>
    %212 = arith.subf %211, %208 : vector<8x32xf32>
    %cst_69 = arith.constant 5.000000e-01 : f32
    %213 = vector.broadcast %cst_69 : f32 to vector<8x32xf32>
    %214 = arith.mulf %212, %213 : vector<8x32xf32>
    %215 = arith.addf %208, %214 : vector<8x32xf32>
    %cst_70 = arith.constant 5.000000e-01 : f32
    %216 = vector.broadcast %cst_70 : f32 to vector<8x32xf32>
    %217 = arith.cmpf oge, %215, %216 : vector<8x32xf32>
    %218 = arith.extui %217 : vector<8x32xi1> to vector<8x32xi32>
    %219 = arith.sitofp %218 : vector<8x32xi32> to vector<8x32xf32>
    %cst_71 = arith.constant 1.000000e+00 : f32
    %220 = vector.broadcast %cst_71 : f32 to vector<8x32xf32>
    %221 = arith.subf %220, %219 : vector<8x32xf32>
    %222 = arith.mulf %215, %221 : vector<8x32xf32>
    %223 = vector.broadcast %139 : vector<1x32xf32> to vector<8x32xf32>
    %224 = arith.mulf %219, %223 : vector<8x32xf32>
    %225 = vector.extract_strided_slice %137 {offsets = [48, 0], sizes = [8, 32], strides = [1, 1]} : vector<64x32xf32> to vector<8x32xf32>
    %226 = arith.subf %225, %222 : vector<8x32xf32>
    %cst_72 = arith.constant 5.000000e-01 : f32
    %227 = vector.broadcast %cst_72 : f32 to vector<8x32xf32>
    %228 = arith.mulf %226, %227 : vector<8x32xf32>
    %229 = arith.addf %222, %228 : vector<8x32xf32>
    %cst_73 = arith.constant 5.000000e-01 : f32
    %230 = vector.broadcast %cst_73 : f32 to vector<8x32xf32>
    %231 = arith.cmpf oge, %229, %230 : vector<8x32xf32>
    %232 = arith.extui %231 : vector<8x32xi1> to vector<8x32xi32>
    %233 = arith.sitofp %232 : vector<8x32xi32> to vector<8x32xf32>
    %cst_74 = arith.constant 1.000000e+00 : f32
    %234 = vector.broadcast %cst_74 : f32 to vector<8x32xf32>
    %235 = arith.subf %234, %233 : vector<8x32xf32>
    %236 = arith.mulf %229, %235 : vector<8x32xf32>
    %237 = vector.broadcast %139 : vector<1x32xf32> to vector<8x32xf32>
    %238 = arith.mulf %233, %237 : vector<8x32xf32>
    %239 = vector.extract_strided_slice %137 {offsets = [56, 0], sizes = [8, 32], strides = [1, 1]} : vector<64x32xf32> to vector<8x32xf32>
    %240 = arith.subf %239, %236 : vector<8x32xf32>
    %cst_75 = arith.constant 5.000000e-01 : f32
    %241 = vector.broadcast %cst_75 : f32 to vector<8x32xf32>
    %242 = arith.mulf %240, %241 : vector<8x32xf32>
    %243 = arith.addf %236, %242 : vector<8x32xf32>
    %cst_76 = arith.constant 5.000000e-01 : f32
    %244 = vector.broadcast %cst_76 : f32 to vector<8x32xf32>
    %245 = arith.cmpf oge, %243, %244 : vector<8x32xf32>
    %246 = arith.extui %245 : vector<8x32xi1> to vector<8x32xi32>
    %247 = arith.sitofp %246 : vector<8x32xi32> to vector<8x32xf32>
    %cst_77 = arith.constant 1.000000e+00 : f32
    %248 = vector.broadcast %cst_77 : f32 to vector<8x32xf32>
    %249 = arith.subf %248, %247 : vector<8x32xf32>
    %250 = arith.mulf %243, %249 : vector<8x32xf32>
    %251 = vector.broadcast %139 : vector<1x32xf32> to vector<8x32xf32>
    %252 = arith.mulf %247, %251 : vector<8x32xf32>
    %c0_78 = arith.constant 0 : index
    %c0_79 = arith.constant 0 : index
    %253 = vector.load %arg12[%c0_78, %c0_79] : memref<8x32xf32, #tpu.memory_space<vmem>>, vector<8x32xf32>
    tpu.vector_store %arg12[%c0_78, %c0_79], %250 {strides = array<i32>} : memref<8x32xf32, #tpu.memory_space<vmem>>, vector<8x32xf32>,
    %254 = tpu.concatenate %154, %168, %182, %196, %210, %224, %238, %252 in 0 : vector<8x32xf32>, vector<8x32xf32>, vector<8x32xf32>, vector<8x32xf32>, vector<8x32xf32>, vector<8x32xf32>, vector<8x32xf32>, vector<8x32xf32> -> vector<64x32xf32>
    %255 = arith.truncf %254 : vector<64x32xf32> to vector<64x32xbf16>
    %256 = vector.shape_cast %255 : vector<64x32xbf16> to vector<8x8x32xbf16>
    %c0_80 = arith.constant 0 : index
    %c0_81 = arith.constant 0 : index
    %c0_82 = arith.constant 0 : index
    %257 = vector.load %arg10[%c0_80, %c0_81, %c0_82] : memref<8x8x32xbf16, #tpu.memory_space<vmem>>, vector<8x8x32xbf16>
    tpu.vector_store %arg10[%c0_80, %c0_81, %c0_82], %256 {strides = array<i32>} : memref<8x8x32xbf16, #tpu.memory_space<vmem>>, vector<8x8x32xbf16>,
    %c0_83 = arith.constant 0 : index
    %c0_84 = arith.constant 0 : index
    %258 = vector.load %arg6[%c0_83, %c0_84] : memref<32x110xbf16, #tpu.memory_space<vmem>>, vector<32x110xbf16>
    %cst_85 = arith.constant dense<0.000000e+00> : vector<64x110xf32>
    %259 = tpu.matmul %255, %258, %cst_85 {dimension_numbers = #tpu.dot_dimension_numbers<[1], [0], [0], [1], [0, 0, 1, 1], [], []>} : vector<64x32xbf16>, vector<32x110xbf16>, vector<64x110xf32> -> vector<64x110xf32>
    %c0_86 = arith.constant 0 : index
    %c0_87 = arith.constant 0 : index
    %260 = vector.load %arg13[%c0_86, %c0_87] : memref<8x110xf32, #tpu.memory_space<vmem>>, vector<8x110xf32>
    %c0_88 = arith.constant 0 : index
    %c0_89 = arith.constant 0 : index
    %261 = vector.load %arg14[%c0_88, %c0_89] : memref<8x110xf32, #tpu.memory_space<vmem>>, vector<8x110xf32>
    %262 = vector.extract_strided_slice %259 {offsets = [0, 0], sizes = [8, 110], strides = [1, 1]} : vector<64x110xf32> to vector<8x110xf32>
    %263 = arith.subf %262, %260 : vector<8x110xf32>
    %cst_90 = arith.constant 5.000000e-01 : f32
    %264 = vector.broadcast %cst_90 : f32 to vector<8x110xf32>
    %265 = arith.mulf %263, %264 : vector<8x110xf32>
    %266 = arith.addf %260, %265 : vector<8x110xf32>
    %cst_91 = arith.constant 5.000000e-01 : f32
    %267 = vector.broadcast %cst_91 : f32 to vector<8x110xf32>
    %268 = arith.cmpf oge, %266, %267 : vector<8x110xf32>
    %269 = arith.extui %268 : vector<8x110xi1> to vector<8x110xi32>
    %270 = arith.sitofp %269 : vector<8x110xi32> to vector<8x110xf32>
    %cst_92 = arith.constant 1.000000e+00 : f32
    %271 = vector.broadcast %cst_92 : f32 to vector<8x110xf32>
    %272 = arith.subf %271, %270 : vector<8x110xf32>
    %273 = arith.mulf %266, %272 : vector<8x110xf32>
    %274 = arith.addf %261, %270 : vector<8x110xf32>
    %275 = vector.extract_strided_slice %259 {offsets = [8, 0], sizes = [8, 110], strides = [1, 1]} : vector<64x110xf32> to vector<8x110xf32>
    %276 = arith.subf %275, %273 : vector<8x110xf32>
    %cst_93 = arith.constant 5.000000e-01 : f32
    %277 = vector.broadcast %cst_93 : f32 to vector<8x110xf32>
    %278 = arith.mulf %276, %277 : vector<8x110xf32>
    %279 = arith.addf %273, %278 : vector<8x110xf32>
    %cst_94 = arith.constant 5.000000e-01 : f32
    %280 = vector.broadcast %cst_94 : f32 to vector<8x110xf32>
    %281 = arith.cmpf oge, %279, %280 : vector<8x110xf32>
    %282 = arith.extui %281 : vector<8x110xi1> to vector<8x110xi32>
    %283 = arith.sitofp %282 : vector<8x110xi32> to vector<8x110xf32>
    %cst_95 = arith.constant 1.000000e+00 : f32
    %284 = vector.broadcast %cst_95 : f32 to vector<8x110xf32>
    %285 = arith.subf %284, %283 : vector<8x110xf32>
    %286 = arith.mulf %279, %285 : vector<8x110xf32>
    %287 = arith.addf %274, %283 : vector<8x110xf32>
    %288 = vector.extract_strided_slice %259 {offsets = [16, 0], sizes = [8, 110], strides = [1, 1]} : vector<64x110xf32> to vector<8x110xf32>
    %289 = arith.subf %288, %286 : vector<8x110xf32>
    %cst_96 = arith.constant 5.000000e-01 : f32
    %290 = vector.broadcast %cst_96 : f32 to vector<8x110xf32>
    %291 = arith.mulf %289, %290 : vector<8x110xf32>
    %292 = arith.addf %286, %291 : vector<8x110xf32>
    %cst_97 = arith.constant 5.000000e-01 : f32
    %293 = vector.broadcast %cst_97 : f32 to vector<8x110xf32>
    %294 = arith.cmpf oge, %292, %293 : vector<8x110xf32>
    %295 = arith.extui %294 : vector<8x110xi1> to vector<8x110xi32>
    %296 = arith.sitofp %295 : vector<8x110xi32> to vector<8x110xf32>
    %cst_98 = arith.constant 1.000000e+00 : f32
    %297 = vector.broadcast %cst_98 : f32 to vector<8x110xf32>
    %298 = arith.subf %297, %296 : vector<8x110xf32>
    %299 = arith.mulf %292, %298 : vector<8x110xf32>
    %300 = arith.addf %287, %296 : vector<8x110xf32>
    %301 = vector.extract_strided_slice %259 {offsets = [24, 0], sizes = [8, 110], strides = [1, 1]} : vector<64x110xf32> to vector<8x110xf32>
    %302 = arith.subf %301, %299 : vector<8x110xf32>
    %cst_99 = arith.constant 5.000000e-01 : f32
    %303 = vector.broadcast %cst_99 : f32 to vector<8x110xf32>
    %304 = arith.mulf %302, %303 : vector<8x110xf32>
    %305 = arith.addf %299, %304 : vector<8x110xf32>
    %cst_100 = arith.constant 5.000000e-01 : f32
    %306 = vector.broadcast %cst_100 : f32 to vector<8x110xf32>
    %307 = arith.cmpf oge, %305, %306 : vector<8x110xf32>
    %308 = arith.extui %307 : vector<8x110xi1> to vector<8x110xi32>
    %309 = arith.sitofp %308 : vector<8x110xi32> to vector<8x110xf32>
    %cst_101 = arith.constant 1.000000e+00 : f32
    %310 = vector.broadcast %cst_101 : f32 to vector<8x110xf32>
    %311 = arith.subf %310, %309 : vector<8x110xf32>
    %312 = arith.mulf %305, %311 : vector<8x110xf32>
    %313 = arith.addf %300, %309 : vector<8x110xf32>
    %314 = vector.extract_strided_slice %259 {offsets = [32, 0], sizes = [8, 110], strides = [1, 1]} : vector<64x110xf32> to vector<8x110xf32>
    %315 = arith.subf %314, %312 : vector<8x110xf32>
    %cst_102 = arith.constant 5.000000e-01 : f32
    %316 = vector.broadcast %cst_102 : f32 to vector<8x110xf32>
    %317 = arith.mulf %315, %316 : vector<8x110xf32>
    %318 = arith.addf %312, %317 : vector<8x110xf32>
    %cst_103 = arith.constant 5.000000e-01 : f32
    %319 = vector.broadcast %cst_103 : f32 to vector<8x110xf32>
    %320 = arith.cmpf oge, %318, %319 : vector<8x110xf32>
    %321 = arith.extui %320 : vector<8x110xi1> to vector<8x110xi32>
    %322 = arith.sitofp %321 : vector<8x110xi32> to vector<8x110xf32>
    %cst_104 = arith.constant 1.000000e+00 : f32
    %323 = vector.broadcast %cst_104 : f32 to vector<8x110xf32>
    %324 = arith.subf %323, %322 : vector<8x110xf32>
    %325 = arith.mulf %318, %324 : vector<8x110xf32>
    %326 = arith.addf %313, %322 : vector<8x110xf32>
    %327 = vector.extract_strided_slice %259 {offsets = [40, 0], sizes = [8, 110], strides = [1, 1]} : vector<64x110xf32> to vector<8x110xf32>
    %328 = arith.subf %327, %325 : vector<8x110xf32>
    %cst_105 = arith.constant 5.000000e-01 : f32
    %329 = vector.broadcast %cst_105 : f32 to vector<8x110xf32>
    %330 = arith.mulf %328, %329 : vector<8x110xf32>
    %331 = arith.addf %325, %330 : vector<8x110xf32>
    %cst_106 = arith.constant 5.000000e-01 : f32
    %332 = vector.broadcast %cst_106 : f32 to vector<8x110xf32>
    %333 = arith.cmpf oge, %331, %332 : vector<8x110xf32>
    %334 = arith.extui %333 : vector<8x110xi1> to vector<8x110xi32>
    %335 = arith.sitofp %334 : vector<8x110xi32> to vector<8x110xf32>
    %cst_107 = arith.constant 1.000000e+00 : f32
    %336 = vector.broadcast %cst_107 : f32 to vector<8x110xf32>
    %337 = arith.subf %336, %335 : vector<8x110xf32>
    %338 = arith.mulf %331, %337 : vector<8x110xf32>
    %339 = arith.addf %326, %335 : vector<8x110xf32>
    %340 = vector.extract_strided_slice %259 {offsets = [48, 0], sizes = [8, 110], strides = [1, 1]} : vector<64x110xf32> to vector<8x110xf32>
    %341 = arith.subf %340, %338 : vector<8x110xf32>
    %cst_108 = arith.constant 5.000000e-01 : f32
    %342 = vector.broadcast %cst_108 : f32 to vector<8x110xf32>
    %343 = arith.mulf %341, %342 : vector<8x110xf32>
    %344 = arith.addf %338, %343 : vector<8x110xf32>
    %cst_109 = arith.constant 5.000000e-01 : f32
    %345 = vector.broadcast %cst_109 : f32 to vector<8x110xf32>
    %346 = arith.cmpf oge, %344, %345 : vector<8x110xf32>
    %347 = arith.extui %346 : vector<8x110xi1> to vector<8x110xi32>
    %348 = arith.sitofp %347 : vector<8x110xi32> to vector<8x110xf32>
    %cst_110 = arith.constant 1.000000e+00 : f32
    %349 = vector.broadcast %cst_110 : f32 to vector<8x110xf32>
    %350 = arith.subf %349, %348 : vector<8x110xf32>
    %351 = arith.mulf %344, %350 : vector<8x110xf32>
    %352 = arith.addf %339, %348 : vector<8x110xf32>
    %353 = vector.extract_strided_slice %259 {offsets = [56, 0], sizes = [8, 110], strides = [1, 1]} : vector<64x110xf32> to vector<8x110xf32>
    %354 = arith.subf %353, %351 : vector<8x110xf32>
    %cst_111 = arith.constant 5.000000e-01 : f32
    %355 = vector.broadcast %cst_111 : f32 to vector<8x110xf32>
    %356 = arith.mulf %354, %355 : vector<8x110xf32>
    %357 = arith.addf %351, %356 : vector<8x110xf32>
    %cst_112 = arith.constant 5.000000e-01 : f32
    %358 = vector.broadcast %cst_112 : f32 to vector<8x110xf32>
    %359 = arith.cmpf oge, %357, %358 : vector<8x110xf32>
    %360 = arith.extui %359 : vector<8x110xi1> to vector<8x110xi32>
    %361 = arith.sitofp %360 : vector<8x110xi32> to vector<8x110xf32>
    %cst_113 = arith.constant 1.000000e+00 : f32
    %362 = vector.broadcast %cst_113 : f32 to vector<8x110xf32>
    %363 = arith.subf %362, %361 : vector<8x110xf32>
    %364 = arith.mulf %357, %363 : vector<8x110xf32>
    %365 = arith.addf %352, %361 : vector<8x110xf32>
    %c0_114 = arith.constant 0 : index
    %c0_115 = arith.constant 0 : index
    %366 = vector.load %arg13[%c0_114, %c0_115] : memref<8x110xf32, #tpu.memory_space<vmem>>, vector<8x110xf32>
    tpu.vector_store %arg13[%c0_114, %c0_115], %364 {strides = array<i32>} : memref<8x110xf32, #tpu.memory_space<vmem>>, vector<8x110xf32>,
    %c0_116 = arith.constant 0 : index
    %c0_117 = arith.constant 0 : index
    %367 = vector.load %arg14[%c0_116, %c0_117] : memref<8x110xf32, #tpu.memory_space<vmem>>, vector<8x110xf32>
    tpu.vector_store %arg14[%c0_116, %c0_117], %365 {strides = array<i32>} : memref<8x110xf32, #tpu.memory_space<vmem>>, vector<8x110xf32>,
    %c0_i32_118 = arith.constant 0 : i32
    %368 = arith.cmpi eq, %arg0, %c0_i32_118 : i32
    %369 = arith.extui %368 : i1 to i32
    %c0_i32_119 = arith.constant 0 : i32
    %370 = arith.cmpi ne, %369, %c0_i32_119 : i32
    scf.if %370 {
      %c0_120 = arith.constant 0 : index
      %c0_121 = arith.constant 0 : index
      %371 = vector.load %arg7[%c0_120, %c0_121] : memref<110x11xf32, #tpu.memory_space<vmem>>, vector<110x11xf32>
      %cst_122 = arith.constant dense<0.000000e+00> : vector<8x11xf32>
      %372 = tpu.matmul %365, %371, %cst_122 {dimension_numbers = #tpu.dot_dimension_numbers<[1], [0], [0], [1], [0, 0, 1, 1], [], []>} : vector<8x110xf32>, vector<110x11xf32>, vector<8x11xf32> -> vector<8x11xf32>
      %cst_123 = arith.constant 1.250000e-01 : f32
      %373 = vector.broadcast %cst_123 : f32 to vector<8x11xf32>
      %374 = arith.mulf %372, %373 : vector<8x11xf32>
      %c0_124 = arith.constant 0 : index
      %c0_125 = arith.constant 0 : index
      %375 = vector.load %arg8[%c0_124, %c0_125] : memref<8x11xf32, #tpu.memory_space<vmem>>, vector<8x11xf32>
      tpu.vector_store %arg8[%c0_124, %c0_125], %374 {strides = array<i32>} : memref<8x11xf32, #tpu.memory_space<vmem>>, vector<8x11xf32>,
    } else {
    }
    return
  }
  func.func @transform_0(%arg0: i32) -> (i32, i32, i32, i32) {
    %c0_i32 = arith.constant 0 : i32
    %c0_i32_0 = arith.constant 0 : i32
    %c0_i32_1 = arith.constant 0 : i32
    %c0_i32_2 = arith.constant 0 : i32
    return %c0_i32, %arg0, %c0_i32_0, %c0_i32_1 : i32, i32, i32, i32
  }
  func.func @transform_1(%arg0: i32) -> (i32, i32, i32) {
    %c0_i32 = arith.constant 0 : i32
    %c0_i32_0 = arith.constant 0 : i32
    %c0_i32_1 = arith.constant 0 : i32
    %c0_i32_2 = arith.constant 0 : i32
    return %c0_i32, %c0_i32_0, %c0_i32_1 : i32, i32, i32
  }
  func.func @transform_2(%arg0: i32) -> (i32, i32) {
    %c0_i32 = arith.constant 0 : i32
    %c0_i32_0 = arith.constant 0 : i32
    %c0_i32_1 = arith.constant 0 : i32
    return %c0_i32, %c0_i32_0 : i32, i32
  }
  func.func @transform_3(%arg0: i32) -> (i32, i32) {
    %c0_i32 = arith.constant 0 : i32
    %c0_i32_0 = arith.constant 0 : i32
    %c0_i32_1 = arith.constant 0 : i32
    return %c0_i32, %c0_i32_0 : i32, i32
  }
  func.func @transform_4(%arg0: i32) -> (i32, i32) {
    %c0_i32 = arith.constant 0 : i32
    %c0_i32_0 = arith.constant 0 : i32
    %c0_i32_1 = arith.constant 0 : i32
    return %c0_i32, %c0_i32_0 : i32, i32
  }
  func.func @transform_5(%arg0: i32) -> (i32, i32) {
    %c0_i32 = arith.constant 0 : i32
    %c0_i32_0 = arith.constant 0 : i32
    %c0_i32_1 = arith.constant 0 : i32
    return %c0_i32, %c0_i32_0 : i32, i32
  }
  func.func @transform_6(%arg0: i32) -> (i32, i32) {
    %c0_i32 = arith.constant 0 : i32
    %c0_i32_0 = arith.constant 0 : i32
    %c0_i32_1 = arith.constant 0 : i32
    return %c0_i32, %c0_i32_0 : i32, i32
  }
  func.func @transform_7(%arg0: i32) -> (i32, i32) {
    %c0_i32 = arith.constant 0 : i32
    %c0_i32_0 = arith.constant 0 : i32
    %c0_i32_1 = arith.constant 0 : i32
    return %c0_i32, %c0_i32_0 : i32, i32
  }
  func.func @transform_8(%arg0: i32) -> (i32, i32, i32) {
    %c0_i32 = arith.constant 0 : i32
    %c0_i32_0 = arith.constant 0 : i32
    %c0_i32_1 = arith.constant 0 : i32
    return %arg0, %c0_i32, %c0_i32_0 : i32, i32, i32
  }
  func.func @transform_9(%arg0: i32) -> (i32, i32, i32) {
    %c0_i32 = arith.constant 0 : i32
    %c0_i32_0 = arith.constant 0 : i32
    %c0_i32_1 = arith.constant 0 : i32
    return %arg0, %c0_i32, %c0_i32_0 : i32, i32, i32
  }
}

</mosaic_0001>

<bundles_post_ra>
// kernel: custom-call.1
= control target key start
LH: loop header
LB: loop body
LE: loop exit
PB: predicated region body
PF: predicated region fallthrough
CT: control target
= control target key end

     0   :  { %vm4_vm0 = vcmask 1043456   ;;  %s23_s0 = inlined_call_operand.vmem [shape: c64[2,4], index: 0, kind: input, shape index: {}]   ;;  %s24_s1 = inlined_call_operand.vmem [shape: f32[2,4], index: 1, kind: output, shape index: {}]  }
   0x1   :  { %v6_v0 = vld [vmem:[%s23_s0 + $0x4] sm:$0xf] }
   0x2   :  { %5 = vst.msk [vmem:[%s24_s1] sm:$0xff] %vm4_vm0, %v6_v0 }

// kernel: custom-call
= control target key start
LH: loop header
LB: loop body
LE: loop exit
PB: predicated region body
PF: predicated region fallthrough
CT: control target
= control target key end

     0   :  { %vm3_vm0 = vcmask 1043456   ;;  %s21_s0 = inlined_call_operand.vmem [shape: c64[2,4], index: 0, kind: input, shape index: {}]   ;;  %s22_s1 = inlined_call_operand.vmem [shape: f32[2,4], index: 1, kind: output, shape index: {}]  }
   0x1   :  { %v2_v0 = vld [vmem:[%s21_s0] sm:$0xf] }
   0x2   :  { %4 = vst.msk [vmem:[%s22_s1] sm:$0xff] %vm3_vm0, %v2_v0 }

// kernel: mu_scbasenet_forward.2
= control target key start
LH: loop header
LB: loop body
LE: loop exit
PB: predicated region body
PF: predicated region fallthrough
CT: control target
= control target key end

     0   :  { %s1035_s18 = smov 0   ;;  %s1037_s19 = smov 0   ;;  %s1162_s0 = inlined_call_operand.vmem [shape: bf16[2,8,8,64], index: 0, kind: input, shape index: {}]   ;;  %s1163_s1 = inlined_call_operand.vmem [shape: bf16[2,64,32], index: 1, kind: input, shape index: {}]   ;;  %s1164_s2 = inlined_call_operand.vmem [shape: bf16[2,32,32], index: 2, kind: input, shape index: {}]   ;;  %s1165_s3 = inlined_call_operand.vmem [shape: bf16[1,32], index: 3, kind: input, shape index: {}]   ;;  %s1166_s4 = inlined_call_operand.vmem [shape: bf16[2,8,8,32], index: 4, kind: output, shape index: {0}]   ;;  %s1167_s5 = inlined_call_operand.vmem [shape: bf16[2,8,8,32], index: 5, kind: output, shape index: {1}]  }
   0x1   :  { %s1039_s20 = smov 0  }
   0x2 LB: > { %s28_s21 = sadd.s32 1, %s998_s19  ;;  %p857_p0 = scmp.ge.s32.totalorder %s1002_s20, 1  ;;  %s1002_s20 = sphi %s1039_s20, %s16_s20   ;;  %s998_s19 = sphi %s1037_s19, %s1169_s19   ;;  %s994_s18 = sphi %s1035_s18, %s1168_s18  }
   0x3   : > { %p30_p1 = scmp.ge.s32.totalorder %s28_s21, 2  ;;  %p233_p2 = scmp.lt.s32.totalorder %s1002_s20, 3 }
   0x5   : > { %s1171_s21 = smov (%p30_p1, %s28_s21), 0  ;;  %p234_p3 = pnand %p857_p0, %p233_p2 }
   0x6   : > { %p289_p4 = scmp.lt.s32.totalorder (!%p234_p3), %s994_s18, 1 }
   0x7   : > { %237 = sbr.rel (%p234_p3) target bundleno = 414 (0x19e), region = 36 }
   0xc   : > { %s1173_s18 = smov (!%p289_p4, %s994_s18), 1  ;;  %vm333_vm0 = vcmask 261120   ;;  %v1004_v2 = vmov 0.0   ;;  %vm396_vm1 = vcmask 523264   ;;  %v438_v12 = vld [vmem:[%s1165_s3] sm:$0x1] }
   0xd   : > { %s1056_s22 = sshll.u32 %s1173_s18, 5  ;;  %334 = vst.msk [vmem:[#allocation2] sm:$0xff] %vm333_vm0, %v1004_v2  ;;  %s936_s29 = sshll.u32 %s1173_s18, 4  ;;  %v439_v15 = vunpack.c.l.bf16 %v438_v12  ;;  %vm524_vm3 = vcmask 257024  }
   0xe   : > { %s302_s25 = scalar_lea.vmem %s1163_s1, %s1056_s22  ;;  %335 = vst.msk [vmem:[#allocation3] sm:$0xff] %vm333_vm0, %v1004_v2  ;;  %s296_s28 = scalar_lea.vmem %s1162_s0, %s1056_s22 }
   0xf   : > { %v946_v0 = vld [vmem:[%s302_s25 + $0x18] sm:$0xff]  ;;  %v945_v1 = vld [vmem:[%s302_s25 + $0x10] sm:$0xff]  ;;  %v944_v3 = vld [vmem:[%s302_s25 + $0x8] sm:$0xff]  ;;  %s307_s7 = scalar_lea.vmem %s1164_s2, %s936_s29  ;;  %v1077_v18 = vperm.slane %v439_v15, 0  ;;  %s1085_s12 = scalar_lea.vmem %s1166_s4, %s1056_s22 }
  0x10   : > { %413 = vmatpush.bf16.msra.mxu0 %v946_v0  ;;  %949 = vmatpush.bf16.msra.mxu2 %v946_v0  ;;  %v943_v4 = vld [vmem:[%s302_s25] sm:$0xff]  ;;  %v941_v6 = vld [vmem:[%s296_s28 + $0x10] sm:$0xff]  ;;  %v940_v7 = vld [vmem:[%s296_s28 + $0x8] sm:$0xff]  ;;  %s1126_s15 = scalar_lea.vmem %s1167_s5, %s1056_s22 }
  0x11   : > { %v939_v5 = vld [vmem:[%s296_s28] sm:$0xff]  ;;  %v942_v8 = vld [vmem:[%s296_s28 + $0x18] sm:$0xff]  ;;  %v948_v9 = vld [vmem:[%s307_s7 + $0x8] sm:$0xff] }
  0x12   : > { %587 = vmatpush.bf16.msra.mxu1 %v948_v9  ;;  %953 = vmatpush.bf16.msra.mxu3 %v948_v9  ;;  %v947_v10 = vld [vmem:[%s307_s7] sm:$0xff] }
  0x14   : > { %414 = vmatpush.bf16.msra.mxu0 %v945_v1  ;;  %950 = vmatpush.bf16.msra.mxu2 %v945_v1  ;;  %v440_v11 = vld [vmem:[#allocation2] sm:$0xff] }
  0x16   : > { %588 = vmatpush.bf16.msra.mxu1 %v947_v10  ;;  %954 = vmatpush.bf16.msra.mxu3 %v947_v10 }
  0x18   : > { %415 = vmatpush.bf16.msra.mxu0 %v944_v3  ;;  %951 = vmatpush.bf16.msra.mxu2 %v944_v3 }
  0x1c   : > { %416 = vmatpush.bf16.msra.mxu0 %v943_v4  ;;  %952 = vmatpush.bf16.msra.mxu2 %v943_v4 }
  0x1f   : > { %900 = vmatmul.msk.bf16.vlgmr.msra.gmra.mxu0 %vm396_vm1, %v939_v5  ;;  %902 = vmatmul.msk.bf16.vlgmr.msra.gmra.mxu2 %vm396_vm1, %v941_v6 }
  0x2f   : > { %901 = vmatmul.msk.bf16.gmra.mxu0 %vm396_vm1, %v940_v7  ;;  %903 = vmatmul.msk.bf16.gmra.mxu2 %vm396_vm1, %v942_v8 }
  0x9c   : > { %v418_v13 = vpop.f32.mrf.mxu0 }
  0x9d   : > { %v441_v14 = vsub.f32 %v418_v13, %v440_v11 }
  0x9f   : > { %v442_v16 = vmul.f32 0.5, %v441_v14 }
  0xa1   : > { %v443_v17 = vadd.f32 %v442_v16, %v440_v11 }
  0xa2   : > { %v428_v54 = vpop.f32.mrf.mxu2 }
  0xa3   : > { %vm444_vm2 = vcmp.ge.f32.partialorder %v443_v17, 0.5 }
  0xa4   : > { %v904_v19 = vsel %vm444_vm2, 1.0, %v1004_v2  ;;  %v420_v24 = vpop.f32.mrf.mxu0 }
  0xa5   : > { %v447_v20 = vsub.f32 1.0, %v904_v19  ;;  %v450_v21 = vmul.f32 %v904_v19, %v1077_v18 }
  0xa7   : > { %v448_v22 = vmul.f32 %v447_v20, %v443_v17  ;;  %v516_v23 = vpack.c.bf16 %v450_v21, %v450_v21 }
  0xa9   : > { %v451_v25 = vsub.f32 %v420_v24, %v448_v22  ;;  %525 = vst.msk [vmem:[%s1085_s12] sm:$0xf] %vm524_vm3, %v516_v23  ;;  %v545_v35 = vunpack.c.l.b16 %v516_v23 }
  0xaa   : > { %v430_v3 = vpop.f32.mrf.mxu2 }
  0xab   : > { %v452_v26 = vmul.f32 0.5, %v451_v25 }
  0xac   : > { %v423_v33 = vpop.f32.mrf.mxu0 }
  0xad   : > { %v453_v27 = vadd.f32 %v452_v26, %v448_v22 }
  0xaf   : > { %vm454_vm4 = vcmp.ge.f32.partialorder %v453_v27, 0.5 }
  0xb0   : > { %v905_v28 = vsel %vm454_vm4, 1.0, %v1004_v2 }
  0xb1   : > { %v457_v29 = vsub.f32 1.0, %v905_v28  ;;  %v459_v30 = vmul.f32 %v905_v28, %v1077_v18 }
  0xb2   : > { %v433_v12 = vpop.f32.mrf.mxu2 }
  0xb3   : > { %v458_v31 = vmul.f32 %v457_v29, %v453_v27  ;;  %v517_v32 = vpack.c.bf16 %v459_v30, %v459_v30 }
  0xb4   : > { %v425_v45 = vpop.f32.mrf.mxu0 }
  0xb5   : > { %v460_v34 = vsub.f32 %v423_v33, %v458_v31  ;;  %526 = vst.msk [vmem:[%s1085_s12 + $0x4] sm:$0xf] %vm524_vm3, %v517_v32  ;;  %v546_v36 = vunpack.c.l.b16 %v517_v32 }
  0xb7   : > { %v461_v37 = vmul.f32 0.5, %v460_v34  ;;  %v553_v38 = vpack.c.b16 %v546_v36, %v545_v35 }
  0xb9   : > { %v462_v39 = vadd.f32 %v461_v37, %v458_v31  ;;  %920 = vmatmul.msk.bf16.vlgmr.msra.gmra.mxu1 %vm333_vm0, %v553_v38  ;;  %v610_v37 = vld [vmem:[#allocation3] sm:$0xff] }
  0xba   : > { %v435_v25 = vpop.f32.mrf.mxu2 }
  0xbb   : > { %vm463_vm5 = vcmp.ge.f32.partialorder %v462_v39, 0.5 }
  0xbc   : > { %v906_v40 = vsel %vm463_vm5, 1.0, %v1004_v2 }
  0xbd   : > { %v466_v41 = vsub.f32 1.0, %v906_v40  ;;  %v468_v42 = vmul.f32 %v906_v40, %v1077_v18 }
  0xbf   : > { %v467_v43 = vmul.f32 %v466_v41, %v462_v39  ;;  %v518_v44 = vpack.c.bf16 %v468_v42, %v468_v42 }
  0xc1   : > { %v469_v46 = vsub.f32 %v425_v45, %v467_v43  ;;  %527 = vst.msk [vmem:[%s1085_s12 + $0x8] sm:$0xf] %vm524_vm3, %v518_v44  ;;  %v547_v56 = vunpack.c.l.b16 %v518_v44 }
  0xc3   : > { %v470_v47 = vmul.f32 0.5, %v469_v46 }
  0xc5   : > { %v471_v48 = vadd.f32 %v470_v47, %v467_v43 }
  0xc7   : > { %vm472_vm6 = vcmp.ge.f32.partialorder %v471_v48, 0.5 }
  0xc8   : > { %v907_v49 = vsel %vm472_vm6, 1.0, %v1004_v2 }
  0xc9   : > { %v475_v50 = vsub.f32 1.0, %v907_v49  ;;  %v477_v51 = vmul.f32 %v907_v49, %v1077_v18 }
  0xcb   : > { %v476_v52 = vmul.f32 %v475_v50, %v471_v48  ;;  %v519_v53 = vpack.c.bf16 %v477_v51, %v477_v51 }
  0xcd   : > { %v478_v55 = vsub.f32 %v428_v54, %v476_v52  ;;  %528 = vst.msk [vmem:[%s1085_s12 + $0xc] sm:$0xf] %vm524_vm3, %v519_v53  ;;  %v548_v57 = vunpack.c.l.b16 %v519_v53 }
  0xcf   : > { %v479_v58 = vmul.f32 0.5, %v478_v55  ;;  %v554_v59 = vpack.c.b16 %v548_v57, %v547_v56 }
  0xd1   : > { %v480_v60 = vadd.f32 %v479_v58, %v476_v52  ;;  %921 = vmatmul.msk.bf16.vlgmr.msra.gmra.mxu3 %vm333_vm0, %v554_v59 }
  0xd3   : > { %vm481_vm7 = vcmp.ge.f32.partialorder %v480_v60, 0.5 }
  0xd4   : > { %v908_v61 = vsel %vm481_vm7, 1.0, %v1004_v2 }
  0xd5   : > { %v484_v62 = vsub.f32 1.0, %v908_v61  ;;  %v486_v63 = vmul.f32 %v908_v61, %v1077_v18 }
  0xd7   : > { %v485_v0 = vmul.f32 %v484_v62, %v480_v60  ;;  %v520_v1 = vpack.c.bf16 %v486_v63, %v486_v63 }
  0xd9   : > { %v487_v4 = vsub.f32 %v430_v3, %v485_v0  ;;  %529 = vst.msk [vmem:[%s1085_s12 + $0x10] sm:$0xf] %vm524_vm3, %v520_v1  ;;  %v549_v14 = vunpack.c.l.b16 %v520_v1 }
  0xdb   : > { %v488_v5 = vmul.f32 0.5, %v487_v4 }
  0xdd   : > { %v489_v6 = vadd.f32 %v488_v5, %v485_v0 }
  0xdf   : > { %vm490_vm8 = vcmp.ge.f32.partialorder %v489_v6, 0.5 }
  0xe0   : > { %v909_v7 = vsel %vm490_vm8, 1.0, %v1004_v2 }
  0xe1   : > { %v493_v8 = vsub.f32 1.0, %v909_v7  ;;  %v495_v9 = vmul.f32 %v909_v7, %v1077_v18 }
  0xe3   : > { %v494_v10 = vmul.f32 %v493_v8, %v489_v6  ;;  %v521_v11 = vpack.c.bf16 %v495_v9, %v495_v9 }
  0xe5   : > { %v496_v13 = vsub.f32 %v433_v12, %v494_v10  ;;  %530 = vst.msk [vmem:[%s1085_s12 + $0x14] sm:$0xf] %vm524_vm3, %v521_v11  ;;  %v550_v15 = vunpack.c.l.b16 %v521_v11 }
  0xe7   : > { %v497_v16 = vmul.f32 0.5, %v496_v13  ;;  %v555_v17 = vpack.c.b16 %v550_v15, %v549_v14 }
  0xe9   : > { %v498_v19 = vadd.f32 %v497_v16, %v494_v10  ;;  %922 = vmatmul.msk.bf16.gmra.mxu3 %vm333_vm0, %v555_v17 }
  0xeb   : > { %vm499_vm9 = vcmp.ge.f32.partialorder %v498_v19, 0.5 }
  0xec   : > { %v910_v20 = vsel %vm499_vm9, 1.0, %v1004_v2 }
  0xed   : > { %v502_v21 = vsub.f32 1.0, %v910_v20  ;;  %v504_v22 = vmul.f32 %v910_v20, %v1077_v18 }
  0xef   : > { %v503_v23 = vmul.f32 %v502_v21, %v498_v19  ;;  %v522_v24 = vpack.c.bf16 %v504_v22, %v504_v22 }
  0xf1   : > { %v505_v26 = vsub.f32 %v435_v25, %v503_v23  ;;  %531 = vst.msk [vmem:[%s1085_s12 + $0x18] sm:$0xf] %vm524_vm3, %v522_v24  ;;  %v551_v34 = vunpack.c.l.b16 %v522_v24 }
  0xf3   : > { %v506_v27 = vmul.f32 0.5, %v505_v26 }
  0xf5   : > { %v507_v28 = vadd.f32 %v506_v27, %v503_v23 }
  0xf7   : > { %vm508_vm10 = vcmp.ge.f32.partialorder %v507_v28, 0.5 }
  0xf8   : > { %v911_v29 = vsel %vm508_vm10, 1.0, %v1004_v2 }
  0xf9   : > { %v511_v30 = vsub.f32 1.0, %v911_v29  ;;  %v513_v31 = vmul.f32 %v911_v29, %v1077_v18 }
  0xfb   : > { %v512_v32 = vmul.f32 %v511_v30, %v507_v28  ;;  %v523_v33 = vpack.c.bf16 %v513_v31, %v513_v31 }
  0xfd   : > { %515 = vst.msk [vmem:[#allocation2] sm:$0xff] %vm333_vm0, %v512_v32  ;;  %v552_v35 = vunpack.c.l.b16 %v523_v33 }
  0xfe   : > { %532 = vst.msk [vmem:[%s1085_s12 + $0x1c] sm:$0xf] %vm524_vm3, %v523_v33 }
  0xff   : > { %v556_v36 = vpack.c.b16 %v552_v35, %v551_v34 }
 0x101   : > { %923 = vmatmul.msk.bf16.gmra.mxu3 %vm333_vm0, %v556_v36 }
 0x136   : > { %v590_v38 = vpop.f32.mrf.mxu1 }
 0x137   : > { %v611_v39 = vsub.f32 %v590_v38, %v610_v37 }
 0x139   : > { %v612_v40 = vmul.f32 0.5, %v611_v39 }
 0x13b   : > { %v613_v41 = vadd.f32 %v612_v40, %v610_v37 }
 0x13d   : > { %vm614_vm11 = vcmp.ge.f32.partialorder %v613_v41, 0.5 }
 0x13e   : > { %v924_v18 = vsel %vm614_vm11, 1.0, %v1004_v2  ;;  %v592_v45 = vpop.f32.mrf.mxu1 }
 0x13f   : > { %v617_v42 = vsub.f32 1.0, %v924_v18  ;;  %v676_v43 = vpack.c.bf16 %v924_v18, %v924_v18 }
 0x141   : > { %v618_v44 = vmul.f32 %v617_v42, %v613_v41  ;;  %684 = vst.msk [vmem:[%s1126_s15] sm:$0xf] %vm524_vm3, %v676_v43 }
 0x143   : > { %v619_v46 = vsub.f32 %v592_v45, %v618_v44 }
 0x145   : > { %v620_v47 = vmul.f32 0.5, %v619_v46 }
 0x147   : > { %v621_v48 = vadd.f32 %v620_v47, %v618_v44 }
 0x149   : > { %vm622_vm12 = vcmp.ge.f32.partialorder %v621_v48, 0.5 }
 0x14a   : > { %v925_v49 = vsel %vm622_vm12, 1.0, %v1004_v2 }
 0x14b   : > { %v677_v50 = vpack.c.bf16 %v925_v49, %v925_v49  ;;  %v625_v51 = vsub.f32 1.0, %v925_v49 }
 0x14d   : > { %685 = vst.msk [vmem:[%s1126_s15 + $0x4] sm:$0xf] %vm524_vm3, %v677_v50  ;;  %v626_v52 = vmul.f32 %v625_v51, %v621_v48 }
 0x154   : > { %v595_v53 = vpop.f32.mrf.mxu3 }
 0x155   : > { %v627_v54 = vsub.f32 %v595_v53, %v626_v52 }
 0x157   : > { %v628_v55 = vmul.f32 0.5, %v627_v54 }
 0x159   : > { %v629_v56 = vadd.f32 %v628_v55, %v626_v52 }
 0x15b   : > { %vm630_vm13 = vcmp.ge.f32.partialorder %v629_v56, 0.5 }
 0x15c   : > { %v926_v57 = vsel %vm630_vm13, 1.0, %v1004_v2  ;;  %v597_v61 = vpop.f32.mrf.mxu3 }
 0x15d   : > { %v633_v58 = vsub.f32 1.0, %v926_v57  ;;  %v678_v59 = vpack.c.bf16 %v926_v57, %v926_v57 }
 0x15f   : > { %v634_v60 = vmul.f32 %v633_v58, %v629_v56  ;;  %686 = vst.msk [vmem:[%s1126_s15 + $0x8] sm:$0xf] %vm524_vm3, %v678_v59 }
 0x161   : > { %v635_v62 = vsub.f32 %v597_v61, %v634_v60 }
 0x163   : > { %v636_v63 = vmul.f32 0.5, %v635_v62 }
 0x165   : > { %v637_v0 = vadd.f32 %v636_v63, %v634_v60 }
 0x167   : > { %vm638_vm14 = vcmp.ge.f32.partialorder %v637_v0, 0.5 }
 0x168   : > { %v927_v1 = vsel %vm638_vm14, 1.0, %v1004_v2 }
 0x169   : > { %v641_v3 = vsub.f32 1.0, %v927_v1  ;;  %v679_v4 = vpack.c.bf16 %v927_v1, %v927_v1 }
 0x16b   : > { %v642_v5 = vmul.f32 %v641_v3, %v637_v0  ;;  %687 = vst.msk [vmem:[%s1126_s15 + $0xc] sm:$0xf] %vm524_vm3, %v679_v4 }
 0x16c   : > { %v600_v6 = vpop.f32.mrf.mxu3 }
 0x16d   : > { %v643_v7 = vsub.f32 %v600_v6, %v642_v5 }
 0x16f   : > { %v644_v8 = vmul.f32 0.5, %v643_v7 }
 0x171   : > { %v645_v9 = vadd.f32 %v644_v8, %v642_v5 }
 0x173   : > { %vm646_vm15 = vcmp.ge.f32.partialorder %v645_v9, 0.5 }
 0x174   : > { %v928_v10 = vsel %vm646_vm15, 1.0, %v1004_v2  ;;  %v602_v14 = vpop.f32.mrf.mxu3 }
 0x175   : > { %v649_v11 = vsub.f32 1.0, %v928_v10  ;;  %v680_v12 = vpack.c.bf16 %v928_v10, %v928_v10 }
 0x177   : > { %v650_v13 = vmul.f32 %v649_v11, %v645_v9  ;;  %688 = vst.msk [vmem:[%s1126_s15 + $0x10] sm:$0xf] %vm524_vm3, %v680_v12 }
 0x179   : > { %v651_v15 = vsub.f32 %v602_v14, %v650_v13 }
 0x17b   : > { %v652_v16 = vmul.f32 0.5, %v651_v15 }
 0x17d   : > { %v653_v17 = vadd.f32 %v652_v16, %v650_v13 }
 0x17f   : > { %vm654_vm1 = vcmp.ge.f32.partialorder %v653_v17, 0.5 }
 0x180   : > { %v929_v19 = vsel %vm654_vm1, 1.0, %v1004_v2 }
 0x181   : > { %v657_v20 = vsub.f32 1.0, %v929_v19  ;;  %v681_v21 = vpack.c.bf16 %v929_v19, %v929_v19 }
 0x183   : > { %v658_v22 = vmul.f32 %v657_v20, %v653_v17  ;;  %689 = vst.msk [vmem:[%s1126_s15 + $0x14] sm:$0xf] %vm524_vm3, %v681_v21 }
 0x184   : > { %v605_v23 = vpop.f32.mrf.mxu3 }
 0x185   : > { %v659_v24 = vsub.f32 %v605_v23, %v658_v22 }
 0x187   : > { %v660_v25 = vmul.f32 0.5, %v659_v24 }
 0x189   : > { %v661_v26 = vadd.f32 %v660_v25, %v658_v22 }
 0x18b   : > { %vm662_vm2 = vcmp.ge.f32.partialorder %v661_v26, 0.5 }
 0x18c   : > { %v930_v27 = vsel %vm662_vm2, 1.0, %v1004_v2  ;;  %v607_v31 = vpop.f32.mrf.mxu3 }
 0x18d   : > { %v665_v28 = vsub.f32 1.0, %v930_v27  ;;  %v682_v29 = vpack.c.bf16 %v930_v27, %v930_v27 }
 0x18f   : > { %v666_v30 = vmul.f32 %v665_v28, %v661_v26  ;;  %690 = vst.msk [vmem:[%s1126_s15 + $0x18] sm:$0xf] %vm524_vm3, %v682_v29 }
 0x191   : > { %v667_v32 = vsub.f32 %v607_v31, %v666_v30 }
 0x193   : > { %v668_v33 = vmul.f32 0.5, %v667_v32 }
 0x195   : > { %v669_v34 = vadd.f32 %v668_v33, %v666_v30 }
 0x197   : > { %vm670_vm4 = vcmp.ge.f32.partialorder %v669_v34, 0.5 }
 0x198   : > { %v931_v35 = vsel %vm670_vm4, 1.0, %v1004_v2 }
 0x199   : > { %v673_v36 = vsub.f32 1.0, %v931_v35  ;;  %v683_v37 = vpack.c.bf16 %v931_v35, %v931_v35 }
 0x19b   : > { %v674_v38 = vmul.f32 %v673_v36, %v669_v34  ;;  %691 = vst.msk [vmem:[%s1126_s15 + $0x1c] sm:$0xf] %vm524_vm3, %v683_v37 }
 0x19d   : > { %675 = vst.msk [vmem:[#allocation3] sm:$0xff] %vm333_vm0, %v674_v38 }
 0x19e PF: > { %s16_s20 = sadd.s32 1, %s1002_s20   ;;  %s1168_s18 = smov %s998_s19 }
 0x19f   : > { %p13_p5 = scmp.ge.s32.totalorder %s16_s20, 4   ;;  %s1169_s19 = smov %s1171_s21 }
 0x1a1   :  { %15 = sbr.rel (!%p13_p5) target bundleno = 2 (0x2), region = 88 }

// kernel: mu_scbasenet_forward.3
= control target key start
LH: loop header
LB: loop body
LE: loop exit
PB: predicated region body
PF: predicated region fallthrough
CT: control target
= control target key end

     0   :  { %vm36_vm0 = vcmask 261120   ;;  %vm34_vm1 = vcmask 621568   ;;  %v869_v12 = vmov 0.0   ;;  %vm380_vm2 = vcmask 1045504   ;;  %s1178_s1 = inlined_call_operand.vmem [shape: bf16[2,32,76], index: 1, kind: input, shape index: {}]   ;;  %s1179_s0 = inlined_call_operand.vmem [shape: bf16[2,8,8,32], index: 0, kind: input, shape index: {}]   ;;  %s1180_s3 = inlined_call_operand.vmem [shape: bf16[76,32], index: 3, kind: input, shape index: {}]   ;;  %s1181_s2 = inlined_call_operand.vmem [shape: bf16[1,76], index: 2, kind: input, shape index: {}]   ;;  %s1182_s8 = inlined_call_operand.vmem [shape: bf16[8,8,76], index: 8, kind: output, shape index: {1}]   ;;  %s1183_s5 = inlined_call_operand.vmem [shape: bf16[32,110], index: 5, kind: input, shape index: {}]   ;;  %s1184_s4 = inlined_call_operand.vmem [shape: bf16[1,32], index: 4, kind: input, shape index: {}]   ;;  %s1185_s9 = inlined_call_operand.vmem [shape: bf16[8,8,32], index: 9, kind: output, shape index: {2}]   ;;  %s1186_s6 = inlined_call_operand.vmem [shape: f32[110,11], index: 6, kind: input, shape index: {}]   ;;  %s1187_s7 = inlined_call_operand.vmem [shape: f32[8,11], index: 7, kind: output, shape index: {0}]  }
   0x1   :  { %v860_v0 = vld [vmem:[%s1178_s1 + $0x18] sm:$0xff]  ;;  %v854_v1 = vld [vmem:[%s1178_s1 + $0x8] sm:$0xff]  ;;  %v859_v2 = vld [vmem:[%s1178_s1 + $0x10] sm:$0xff]  ;;  %35 = vst.msk [vmem:[#allocation2] sm:$0xff] %vm34_vm1, %v869_v12  ;;  %vm300_vm4 = vcmask 617472   ;;  %vm498_vm13 = vcmask 257024  }
   0x2   :  { %118 = vmatpush.bf16.msra.mxu0 %v860_v0  ;;  %191 = vmatpush.bf16.msra.mxu1 %v854_v1  ;;  %v853_v3 = vld [vmem:[%s1178_s1] sm:$0xff]  ;;  %v856_v6 = vld [vmem:[%s1179_s0 + $0x28] sm:$0xff]  ;;  %v857_v8 = vld [vmem:[%s1179_s0 + $0x30] sm:$0xff]  ;;  %37 = vst.msk [vmem:[#allocation3] sm:$0xff] %vm36_vm0, %v869_v12 }
   0x3   :  { %v855_v4 = vld [vmem:[%s1179_s0 + $0x20] sm:$0xff]  ;;  %v850_v7 = vld [vmem:[%s1179_s0 + $0x8] sm:$0xff]  ;;  %v851_v9 = vld [vmem:[%s1179_s0 + $0x10] sm:$0xff] }
   0x4   :  { %v849_v5 = vld [vmem:[%s1179_s0] sm:$0xff]  ;;  %v858_v10 = vld [vmem:[%s1179_s0 + $0x38] sm:$0xff]  ;;  %v863_v18 = vld [vmem:[%s1180_s3 + $0x10] sm:$0xff] }
   0x5   :  { %v852_v11 = vld [vmem:[%s1179_s0 + $0x18] sm:$0xff]  ;;  %v813_v13 = vld [vmem:[%s1180_s3 + $0x20] sm:$0xf]  ;;  %v865_v14 = vld [vmem:[%s1180_s3 + $0x20] sm:$0x30] }
   0x6   :  { %119 = vmatpush.bf16.msra.mxu0 %v859_v2  ;;  %192 = vmatpush.bf16.msra.mxu1 %v853_v3  ;;  %v814_v15 = vor.u32 %v865_v14, %v813_v13  ;;  %v864_v17 = vld [vmem:[%s1180_s3 + $0x18] sm:$0xff]  ;;  %v862_v19 = vld [vmem:[%s1180_s3 + $0x8] sm:$0xff]  ;;  %v861_v20 = vld [vmem:[%s1180_s3] sm:$0xff] }
   0x7   :  { %v214_v24 = vld [vmem:[%s1181_s2] sm:$0x1] }
   0x8   :  { %v382_v16 = vsel %vm380_vm2, %v814_v15, 0  ;;  %v216_v23 = vld [vmem:[#allocation2] sm:$0xff]  ;;  %v215_v27 = vunpack.c.l.bf16 %v214_v24 }
   0x9   :  { %755 = vmatmul.msk.bf16.vlgmr.msra.gmra.mxu0 %vm36_vm0, %v855_v4  ;;  %783 = vmatmul.msk.bf16.vlgmr.msra.gmra.mxu1 %vm36_vm0, %v849_v5 }
   0xa   :  { %387 = vmatpush.bf16.msra.mxu2 %v382_v16  ;;  %v990_v30 = vperm.slane %v215_v27, 0 }
   0xe   :  { %388 = vmatpush.bf16.msra.mxu2 %v864_v17 }
  0x12   :  { %389 = vmatpush.bf16.msra.mxu2 %v863_v18 }
  0x16   :  { %390 = vmatpush.bf16.msra.mxu2 %v862_v19 }
  0x19   :  { %756 = vmatmul.msk.bf16.gmra.mxu0 %vm36_vm0, %v856_v6  ;;  %784 = vmatmul.msk.bf16.gmra.mxu1 %vm36_vm0, %v850_v7 }
  0x1a   :  { %391 = vmatpush.bf16.msra.mxu2 %v861_v20 }
  0x29   :  { %757 = vmatmul.msk.bf16.gmra.mxu0 %vm36_vm0, %v857_v8  ;;  %785 = vmatmul.msk.bf16.gmra.mxu1 %vm36_vm0, %v851_v9 }
  0x39   :  { %758 = vmatmul.msk.bf16.gmra.mxu0 %vm36_vm0, %v858_v10  ;;  %786 = vmatmul.msk.bf16.gmra.mxu1 %vm36_vm0, %v852_v11 }
  0x86   :  { %v121_v21 = vpop.f32.mrf.mxu0  ;;  %v194_v22 = vpop.f32.mrf.mxu1 }
  0x87   :  { %v195_v25 = vadd.f32 %v194_v22, %v121_v21 }
  0x89   :  { %v217_v26 = vsub.f32 %v195_v25, %v216_v23 }
  0x8b   :  { %v218_v28 = vmul.f32 0.5, %v217_v26 }
  0x8d   :  { %v219_v29 = vadd.f32 %v218_v28, %v216_v23 }
  0x8e   :  { %v123_v31 = vpop.f32.mrf.mxu0  ;;  %v196_v32 = vpop.f32.mrf.mxu1 }
  0x8f   :  { %vm220_vm3 = vcmp.ge.f32.partialorder %v219_v29, 0.5  ;;  %v197_v36 = vadd.f32 %v196_v32, %v123_v31 }
  0x90   :  { %v787_v33 = vsel %vm220_vm3, 1.0, %v869_v12 }
  0x91   :  { %v223_v34 = vsub.f32 1.0, %v787_v33  ;;  %v226_v35 = vmul.f32 %v787_v33, %v990_v30 }
  0x93   :  { %v224_v37 = vmul.f32 %v223_v34, %v219_v29  ;;  %v292_v38 = vpack.c.bf16 %v226_v35, %v226_v35 }
  0x95   :  { %v227_v39 = vsub.f32 %v197_v36, %v224_v37  ;;  %301 = vst.msk [vmem:[%s1182_s8] sm:$0xf] %vm300_vm4, %v292_v38  ;;  %v327_v51 = vunpack.c.l.b16 %v292_v38 }
  0x96   :  { %v126_v42 = vpop.f32.mrf.mxu0  ;;  %v199_v43 = vpop.f32.mrf.mxu1 }
  0x97   :  { %v228_v40 = vmul.f32 0.5, %v227_v39  ;;  %v200_v45 = vadd.f32 %v199_v43, %v126_v42 }
  0x99   :  { %v229_v41 = vadd.f32 %v228_v40, %v224_v37 }
  0x9b   :  { %vm230_vm5 = vcmp.ge.f32.partialorder %v229_v41, 0.5 }
  0x9c   :  { %v788_v44 = vsel %vm230_vm5, 1.0, %v869_v12  ;;  %vm38_vm5 = vcmask 900096  }
  0x9d   :  { %v233_v46 = vsub.f32 1.0, %v788_v44  ;;  %v235_v47 = vmul.f32 %v788_v44, %v990_v30  ;;  %39 = vst.msk [vmem:[#allocation4] sm:$0xff] %vm38_vm5, %v869_v12 }
  0x9e   :  { %v128_v56 = vpop.f32.mrf.mxu0  ;;  %v201_v57 = vpop.f32.mrf.mxu1  ;;  %40 = vst.msk [vmem:[#allocation5] sm:$0xff] %vm38_vm5, %v869_v12 }
  0x9f   :  { %v234_v48 = vmul.f32 %v233_v46, %v229_v41  ;;  %v293_v49 = vpack.c.bf16 %v235_v47, %v235_v47  ;;  %v202_v61 = vadd.f32 %v201_v57, %v128_v56 }
  0xa1   :  { %v236_v50 = vsub.f32 %v200_v45, %v234_v48  ;;  %302 = vst.msk [vmem:[%s1182_s8 + $0x4] sm:$0xf] %vm300_vm4, %v293_v49  ;;  %v328_v52 = vunpack.c.l.b16 %v293_v49 }
  0xa3   :  { %v237_v53 = vmul.f32 0.5, %v236_v50  ;;  %v335_v54 = vpack.c.b16 %v328_v52, %v327_v51 }
  0xa5   :  { %v238_v55 = vadd.f32 %v237_v53, %v234_v48  ;;  %815 = vmatmul.msk.bf16.vlgmr.msra.gmra.mxu2 %vm34_vm1, %v335_v54 }
  0xa6   :  { %v131_v3 = vpop.f32.mrf.mxu0  ;;  %v204_v4 = vpop.f32.mrf.mxu1 }
  0xa7   :  { %vm239_vm6 = vcmp.ge.f32.partialorder %v238_v55, 0.5  ;;  %v205_v6 = vadd.f32 %v204_v4, %v131_v3 }
  0xa8   :  { %v789_v58 = vsel %vm239_vm6, 1.0, %v869_v12 }
  0xa9   :  { %v242_v59 = vsub.f32 1.0, %v789_v58  ;;  %v244_v60 = vmul.f32 %v789_v58, %v990_v30 }
  0xab   :  { %v243_v62 = vmul.f32 %v242_v59, %v238_v55  ;;  %v294_v63 = vpack.c.bf16 %v244_v60, %v244_v60 }
  0xad   :  { %v245_v0 = vsub.f32 %v202_v61, %v243_v62  ;;  %303 = vst.msk [vmem:[%s1182_s8 + $0x8] sm:$0xf] %vm300_vm4, %v294_v63  ;;  %v329_v13 = vunpack.c.l.b16 %v294_v63  ;;  %v867_v63 = vld [vmem:[%s1183_s5 + $0x8] sm:$0xff] }
  0xae   :  { %v133_v18 = vpop.f32.mrf.mxu0  ;;  %v206_v19 = vpop.f32.mrf.mxu1  ;;  %561 = vmatpush.bf16.msra.mxu3 %v867_v63 }
  0xaf   :  { %v246_v1 = vmul.f32 0.5, %v245_v0  ;;  %v207_v23 = vadd.f32 %v206_v19, %v133_v18  ;;  %v415_v0 = vld [vmem:[#allocation3] sm:$0xff] }
  0xb1   :  { %v247_v2 = vadd.f32 %v246_v1, %v243_v62  ;;  %v413_v1 = vld [vmem:[%s1184_s4] sm:$0x1] }
  0xb2   :  { %v414_v4 = vunpack.c.l.bf16 %v413_v1 }
  0xb3   :  { %vm248_vm7 = vcmp.ge.f32.partialorder %v247_v2, 0.5 }
  0xb4   :  { %v790_v5 = vsel %vm248_vm7, 1.0, %v869_v12 }
  0xb5   :  { %v251_v7 = vsub.f32 1.0, %v790_v5  ;;  %v253_v8 = vmul.f32 %v790_v5, %v990_v30 }
  0xb6   :  { %v136_v29 = vpop.f32.mrf.mxu0  ;;  %v209_v31 = vpop.f32.mrf.mxu1 }
  0xb7   :  { %v252_v9 = vmul.f32 %v251_v7, %v247_v2  ;;  %v295_v10 = vpack.c.bf16 %v253_v8, %v253_v8  ;;  %v210_v33 = vadd.f32 %v209_v31, %v136_v29  ;;  %v1054_v7 = vperm.slane %v414_v4, 0 }
  0xb9   :  { %v254_v11 = vsub.f32 %v205_v6, %v252_v9  ;;  %304 = vst.msk [vmem:[%s1182_s8 + $0xc] sm:$0xf] %vm300_vm4, %v295_v10  ;;  %v330_v14 = vunpack.c.l.b16 %v295_v10 }
  0xbb   :  { %v255_v15 = vmul.f32 0.5, %v254_v11  ;;  %v336_v16 = vpack.c.b16 %v330_v14, %v329_v13 }
  0xbd   :  { %v256_v17 = vadd.f32 %v255_v15, %v252_v9  ;;  %816 = vmatmul.msk.bf16.gmra.mxu2 %vm34_vm1, %v336_v16 }
  0xbe   :  { %v138_v44 = vpop.f32.mrf.mxu0  ;;  %v211_v45 = vpop.f32.mrf.mxu1 }
  0xbf   :  { %vm257_vm8 = vcmp.ge.f32.partialorder %v256_v17, 0.5  ;;  %v212_v49 = vadd.f32 %v211_v45, %v138_v44 }
  0xc0   :  { %v791_v20 = vsel %vm257_vm8, 1.0, %v869_v12 }
  0xc1   :  { %v260_v21 = vsub.f32 1.0, %v791_v20  ;;  %v262_v22 = vmul.f32 %v791_v20, %v990_v30 }
  0xc3   :  { %v261_v24 = vmul.f32 %v260_v21, %v256_v17  ;;  %v296_v25 = vpack.c.bf16 %v262_v22, %v262_v22 }
  0xc5   :  { %v263_v26 = vsub.f32 %v207_v23, %v261_v24  ;;  %305 = vst.msk [vmem:[%s1182_s8 + $0x10] sm:$0xf] %vm300_vm4, %v296_v25  ;;  %v331_v39 = vunpack.c.l.b16 %v296_v25 }
  0xc7   :  { %v264_v27 = vmul.f32 0.5, %v263_v26 }
  0xc9   :  { %v265_v28 = vadd.f32 %v264_v27, %v261_v24 }
  0xcb   :  { %vm266_vm9 = vcmp.ge.f32.partialorder %v265_v28, 0.5 }
  0xcc   :  { %v792_v32 = vsel %vm266_vm9, 1.0, %v869_v12 }
  0xcd   :  { %v269_v34 = vsub.f32 1.0, %v792_v32  ;;  %v271_v35 = vmul.f32 %v792_v32, %v990_v30 }
  0xcf   :  { %v270_v36 = vmul.f32 %v269_v34, %v265_v28  ;;  %v297_v37 = vpack.c.bf16 %v271_v35, %v271_v35 }
  0xd1   :  { %v272_v38 = vsub.f32 %v210_v33, %v270_v36  ;;  %306 = vst.msk [vmem:[%s1182_s8 + $0x14] sm:$0xf] %vm300_vm4, %v297_v37  ;;  %v332_v40 = vunpack.c.l.b16 %v297_v37 }
  0xd3   :  { %v273_v41 = vmul.f32 0.5, %v272_v38  ;;  %v337_v42 = vpack.c.b16 %v332_v40, %v331_v39 }
  0xd5   :  { %v274_v43 = vadd.f32 %v273_v41, %v270_v36  ;;  %817 = vmatmul.msk.bf16.gmra.mxu2 %vm34_vm1, %v337_v42 }
  0xd7   :  { %vm275_vm10 = vcmp.ge.f32.partialorder %v274_v43, 0.5 }
  0xd8   :  { %v793_v46 = vsel %vm275_vm10, 1.0, %v869_v12 }
  0xd9   :  { %v278_v47 = vsub.f32 1.0, %v793_v46  ;;  %v280_v48 = vmul.f32 %v793_v46, %v990_v30 }
  0xdb   :  { %v279_v50 = vmul.f32 %v278_v47, %v274_v43  ;;  %v298_v51 = vpack.c.bf16 %v280_v48, %v280_v48 }
  0xdd   :  { %v281_v52 = vsub.f32 %v212_v49, %v279_v50  ;;  %307 = vst.msk [vmem:[%s1182_s8 + $0x18] sm:$0xf] %vm300_vm4, %v298_v51  ;;  %v333_v60 = vunpack.c.l.b16 %v298_v51 }
  0xdf   :  { %v282_v53 = vmul.f32 0.5, %v281_v52 }
  0xe1   :  { %v283_v54 = vadd.f32 %v282_v53, %v279_v50 }
  0xe3   :  { %vm284_vm11 = vcmp.ge.f32.partialorder %v283_v54, 0.5 }
  0xe4   :  { %v794_v55 = vsel %vm284_vm11, 1.0, %v869_v12 }
  0xe5   :  { %v287_v56 = vsub.f32 1.0, %v794_v55  ;;  %v289_v57 = vmul.f32 %v794_v55, %v990_v30  ;;  %v866_v30 = vld [vmem:[%s1183_s5] sm:$0xff] }
  0xe6   :  { %562 = vmatpush.bf16.msra.mxu3 %v866_v30 }
  0xe7   :  { %v288_v58 = vmul.f32 %v287_v56, %v283_v54  ;;  %v299_v59 = vpack.c.bf16 %v289_v57, %v289_v57 }
  0xe9   :  { %291 = vst.msk [vmem:[#allocation2] sm:$0xff] %vm34_vm1, %v288_v58  ;;  %v334_v61 = vunpack.c.l.b16 %v299_v59 }
  0xea   :  { %308 = vst.msk [vmem:[%s1182_s8 + $0x1c] sm:$0xf] %vm300_vm4, %v299_v59 }
  0xeb   :  { %v338_v62 = vpack.c.b16 %v334_v61, %v333_v60 }
  0xed   :  { %818 = vmatmul.msk.bf16.gmra.mxu2 %vm34_vm1, %v338_v62 }
 0x128   :  { %v393_v2 = vpop.f32.mrf.mxu2 }
 0x129   :  { %v416_v3 = vsub.f32 %v393_v2, %v415_v0 }
 0x12b   :  { %v417_v5 = vmul.f32 0.5, %v416_v3 }
 0x12d   :  { %v418_v6 = vadd.f32 %v417_v5, %v415_v0 }
 0x12f   :  { %vm419_vm12 = vcmp.ge.f32.partialorder %v418_v6, 0.5 }
 0x130   :  { %v819_v8 = vsel %vm419_vm12, 1.0, %v869_v12  ;;  %v395_v14 = vpop.f32.mrf.mxu2 }
 0x131   :  { %v422_v9 = vsub.f32 1.0, %v819_v8  ;;  %v425_v10 = vmul.f32 %v819_v8, %v1054_v7 }
 0x133   :  { %v423_v11 = vmul.f32 %v422_v9, %v418_v6  ;;  %v490_v13 = vpack.c.bf16 %v425_v10, %v425_v10 }
 0x135   :  { %v426_v15 = vsub.f32 %v395_v14, %v423_v11  ;;  %499 = vst.msk [vmem:[%s1185_s9] sm:$0xf] %vm498_vm13, %v490_v13  ;;  %v519_v25 = vunpack.c.l.b16 %v490_v13 }
 0x137   :  { %v427_v16 = vmul.f32 0.5, %v426_v15 }
 0x139   :  { %v428_v17 = vadd.f32 %v427_v16, %v423_v11 }
 0x13b   :  { %vm429_vm14 = vcmp.ge.f32.partialorder %v428_v17, 0.5 }
 0x13c   :  { %v820_v18 = vsel %vm429_vm14, 1.0, %v869_v12  ;;  %vm705_vm14 = vcmask 89088  }
 0x13d   :  { %v432_v19 = vsub.f32 1.0, %v820_v18  ;;  %v434_v20 = vmul.f32 %v820_v18, %v1054_v7 }
 0x13f   :  { %v433_v21 = vmul.f32 %v432_v19, %v428_v17  ;;  %v491_v22 = vpack.c.bf16 %v434_v20, %v434_v20 }
 0x140   :  { %v398_v23 = vpop.f32.mrf.mxu2 }
 0x141   :  { %v435_v24 = vsub.f32 %v398_v23, %v433_v21  ;;  %500 = vst.msk [vmem:[%s1185_s9 + $0x4] sm:$0xf] %vm498_vm13, %v491_v22  ;;  %v520_v26 = vunpack.c.l.b16 %v491_v22 }
 0x143   :  { %v436_v27 = vmul.f32 0.5, %v435_v24  ;;  %v527_v28 = vpack.c.b16 %v520_v26, %v519_v25 }
 0x145   :  { %v437_v29 = vadd.f32 %v436_v27, %v433_v21  ;;  %835 = vmatmul.msk.bf16.vlgmr.msra.gmra.mxu3 %vm36_vm0, %v527_v28  ;;  %v584_v27 = vld [vmem:[#allocation4] sm:$0xff]  ;;  %v677_v28 = vld [vmem:[%s1186_s6 + $0x68] sm:$0x3f] }
 0x146   :  { %847 = vmatpush.msk.msrb.mxu0 %vm380_vm2, %v677_v28 }
 0x147   :  { %vm438_vm15 = vcmp.ge.f32.partialorder %v437_v29, 0.5 }
 0x148   :  { %v821_v31 = vsel %vm438_vm15, 1.0, %v869_v12  ;;  %v400_v36 = vpop.f32.mrf.mxu2 }
 0x149   :  { %v441_v32 = vsub.f32 1.0, %v821_v31  ;;  %v443_v33 = vmul.f32 %v821_v31, %v1054_v7 }
 0x14b   :  { %v442_v34 = vmul.f32 %v441_v32, %v437_v29  ;;  %v492_v35 = vpack.c.bf16 %v443_v33, %v443_v33 }
 0x14d   :  { %v444_v37 = vsub.f32 %v400_v36, %v442_v34  ;;  %501 = vst.msk [vmem:[%s1185_s9 + $0x8] sm:$0xf] %vm498_vm13, %v492_v35  ;;  %v521_v47 = vunpack.c.l.b16 %v492_v35  ;;  %v676_v36 = vld [vmem:[%s1186_s6 + $0x60] sm:$0xff] }
 0x14e   :  { %687 = vmatpush.msrb.mxu0 %v676_v36 }
 0x14f   :  { %v445_v38 = vmul.f32 0.5, %v444_v37  ;;  %v675_v37 = vld [vmem:[%s1186_s6 + $0x58] sm:$0xff] }
 0x150   :  { %688 = vmatpush.msrb.mxu0 %v675_v37 }
 0x151   :  { %v446_v39 = vadd.f32 %v445_v38, %v442_v34 }
 0x153   :  { %vm447_vm1 = vcmp.ge.f32.partialorder %v446_v39, 0.5 }
 0x154   :  { %v822_v40 = vsel %vm447_vm1, 1.0, %v869_v12 }
 0x155   :  { %v450_v41 = vsub.f32 1.0, %v822_v40  ;;  %v452_v42 = vmul.f32 %v822_v40, %v1054_v7  ;;  %v674_v40 = vld [vmem:[%s1186_s6 + $0x50] sm:$0xff] }
 0x156   :  { %689 = vmatpush.msrb.mxu0 %v674_v40 }
 0x157   :  { %v451_v43 = vmul.f32 %v450_v41, %v446_v39  ;;  %v493_v44 = vpack.c.bf16 %v452_v42, %v452_v42 }
 0x158   :  { %v403_v45 = vpop.f32.mrf.mxu2 }
 0x159   :  { %v453_v46 = vsub.f32 %v403_v45, %v451_v43  ;;  %502 = vst.msk [vmem:[%s1185_s9 + $0xc] sm:$0xf] %vm498_vm13, %v493_v44  ;;  %v522_v48 = vunpack.c.l.b16 %v493_v44 }
 0x15b   :  { %v454_v49 = vmul.f32 0.5, %v453_v46  ;;  %v528_v50 = vpack.c.b16 %v522_v48, %v521_v47  ;;  %v673_v46 = vld [vmem:[%s1186_s6 + $0x48] sm:$0xff]  ;;  %v672_v47 = vld [vmem:[%s1186_s6 + $0x40] sm:$0xff] }
 0x15c   :  { %690 = vmatpush.msrb.mxu0 %v673_v46 }
 0x15d   :  { %v455_v51 = vadd.f32 %v454_v49, %v451_v43  ;;  %836 = vmatmul.msk.bf16.gmra.mxu3 %vm36_vm0, %v528_v50 }
 0x15e   :  { %691 = vmatpush.msrb.mxu0 %v672_v47 }
 0x15f   :  { %vm456_vm3 = vcmp.ge.f32.partialorder %v455_v51, 0.5 }
 0x160   :  { %v823_v52 = vsel %vm456_vm3, 1.0, %v869_v12  ;;  %v405_v57 = vpop.f32.mrf.mxu2 }
 0x161   :  { %v459_v53 = vsub.f32 1.0, %v823_v52  ;;  %v461_v54 = vmul.f32 %v823_v52, %v1054_v7 }
 0x163   :  { %v460_v55 = vmul.f32 %v459_v53, %v455_v51  ;;  %v494_v56 = vpack.c.bf16 %v461_v54, %v461_v54 }
 0x165   :  { %v462_v58 = vsub.f32 %v405_v57, %v460_v55  ;;  %503 = vst.msk [vmem:[%s1185_s9 + $0x10] sm:$0xf] %vm498_vm13, %v494_v56  ;;  %v523_v3 = vunpack.c.l.b16 %v494_v56  ;;  %v670_v56 = vld [vmem:[%s1186_s6 + $0x30] sm:$0xff] }
 0x167   :  { %v463_v59 = vmul.f32 0.5, %v462_v58 }
 0x169   :  { %v464_v60 = vadd.f32 %v463_v59, %v460_v55  ;;  %v671_v55 = vld [vmem:[%s1186_s6 + $0x38] sm:$0xff]  ;;  %v669_v59 = vld [vmem:[%s1186_s6 + $0x28] sm:$0xff] }
 0x16a   :  { %692 = vmatpush.msrb.mxu0 %v671_v55 }
 0x16b   :  { %vm465_vm4 = vcmp.ge.f32.partialorder %v464_v60, 0.5 }
 0x16c   :  { %v824_v61 = vsel %vm465_vm4, 1.0, %v869_v12  ;;  %693 = vmatpush.msrb.mxu0 %v670_v56 }
 0x16d   :  { %v468_v62 = vsub.f32 1.0, %v824_v61  ;;  %v470_v63 = vmul.f32 %v824_v61, %v1054_v7 }
 0x16e   :  { %694 = vmatpush.msrb.mxu0 %v669_v59 }
 0x16f   :  { %v469_v30 = vmul.f32 %v468_v62, %v464_v60  ;;  %v495_v0 = vpack.c.bf16 %v470_v63, %v470_v63 }
 0x170   :  { %v408_v1 = vpop.f32.mrf.mxu2 }
 0x171   :  { %v471_v2 = vsub.f32 %v408_v1, %v469_v30  ;;  %504 = vst.msk [vmem:[%s1185_s9 + $0x14] sm:$0xf] %vm498_vm13, %v495_v0  ;;  %v524_v4 = vunpack.c.l.b16 %v495_v0  ;;  %v668_v0 = vld [vmem:[%s1186_s6 + $0x20] sm:$0xff]  ;;  %v667_v1 = vld [vmem:[%s1186_s6 + $0x18] sm:$0xff] }
 0x172   :  { %695 = vmatpush.msrb.mxu0 %v668_v0 }
 0x173   :  { %v472_v5 = vmul.f32 0.5, %v471_v2  ;;  %v529_v6 = vpack.c.b16 %v524_v4, %v523_v3 }
 0x174   :  { %696 = vmatpush.msrb.mxu0 %v667_v1 }
 0x175   :  { %v473_v8 = vadd.f32 %v472_v5, %v469_v30  ;;  %837 = vmatmul.msk.bf16.gmra.mxu3 %vm36_vm0, %v529_v6 }
 0x177   :  { %vm474_vm6 = vcmp.ge.f32.partialorder %v473_v8, 0.5 }
 0x178   :  { %v825_v9 = vsel %vm474_vm6, 1.0, %v869_v12  ;;  %v410_v15 = vpop.f32.mrf.mxu2 }
 0x179   :  { %v477_v10 = vsub.f32 1.0, %v825_v9  ;;  %v479_v11 = vmul.f32 %v825_v9, %v1054_v7  ;;  %v666_v9 = vld [vmem:[%s1186_s6 + $0x10] sm:$0xff] }
 0x17a   :  { %697 = vmatpush.msrb.mxu0 %v666_v9 }
 0x17b   :  { %v478_v13 = vmul.f32 %v477_v10, %v473_v8  ;;  %v496_v14 = vpack.c.bf16 %v479_v11, %v479_v11 }
 0x17d   :  { %v480_v16 = vsub.f32 %v410_v15, %v478_v13  ;;  %505 = vst.msk [vmem:[%s1185_s9 + $0x18] sm:$0xf] %vm498_vm13, %v496_v14  ;;  %v525_v24 = vunpack.c.l.b16 %v496_v14  ;;  %v664_v15 = vld [vmem:[%s1186_s6] sm:$0xff] }
 0x17f   :  { %v481_v17 = vmul.f32 0.5, %v480_v16 }
 0x181   :  { %v482_v18 = vadd.f32 %v481_v17, %v478_v13  ;;  %v665_v13 = vld [vmem:[%s1186_s6 + $0x8] sm:$0xff] }
 0x182   :  { %698 = vmatpush.msrb.mxu0 %v665_v13 }
 0x183   :  { %vm483_vm7 = vcmp.ge.f32.partialorder %v482_v18, 0.5 }
 0x184   :  { %v826_v19 = vsel %vm483_vm7, 1.0, %v869_v12  ;;  %699 = vmatpush.msrb.mxu0 %v664_v15 }
 0x185   :  { %v486_v20 = vsub.f32 1.0, %v826_v19  ;;  %v488_v21 = vmul.f32 %v826_v19, %v1054_v7 }
 0x187   :  { %v487_v22 = vmul.f32 %v486_v20, %v482_v18  ;;  %v497_v23 = vpack.c.bf16 %v488_v21, %v488_v21 }
 0x189   :  { %489 = vst.msk [vmem:[#allocation3] sm:$0xff] %vm36_vm0, %v487_v22  ;;  %v526_v25 = vunpack.c.l.b16 %v497_v23 }
 0x18a   :  { %506 = vst.msk [vmem:[%s1185_s9 + $0x1c] sm:$0xf] %vm498_vm13, %v497_v23 }
 0x18b   :  { %v530_v26 = vpack.c.b16 %v526_v25, %v525_v24  ;;  %v585_v24 = vld [vmem:[#allocation5] sm:$0xff] }
 0x18d   :  { %838 = vmatmul.msk.bf16.gmra.mxu3 %vm36_vm0, %v530_v26 }
 0x1c8   :  { %v564_v7 = vpop.f32.mrf.mxu3 }
 0x1c9   :  { %v586_v29 = vsub.f32 %v564_v7, %v584_v27 }
 0x1cb   :  { %v587_v31 = vmul.f32 0.5, %v586_v29 }
 0x1cd   :  { %v588_v32 = vadd.f32 %v587_v31, %v584_v27 }
 0x1cf   :  { %vm589_vm8 = vcmp.ge.f32.partialorder %v588_v32, 0.5 }
 0x1d0   :  { %v1118_v33 = vsel %vm589_vm8, 1.0, %v869_v12  ;;  %v566_v38 = vpop.f32.mrf.mxu3 }
 0x1d1   :  { %v592_v34 = vsub.f32 1.0, %v1118_v33  ;;  %v594_v26 = vadd.f32 %v1118_v33, %v585_v24 }
 0x1d3   :  { %v593_v35 = vmul.f32 %v592_v34, %v588_v32 }
 0x1d5   :  { %v595_v39 = vsub.f32 %v566_v38, %v593_v35 }
 0x1d7   :  { %v596_v41 = vmul.f32 0.5, %v595_v39 }
 0x1d9   :  { %v597_v42 = vadd.f32 %v596_v41, %v593_v35 }
 0x1db   :  { %vm598_vm0 = vcmp.ge.f32.partialorder %v597_v42, 0.5 }
 0x1dc   :  { %v1131_v43 = vsel %vm598_vm0, 1.0, %v869_v12 }
 0x1dd   :  { %v601_v44 = vsub.f32 1.0, %v1131_v43  ;;  %v603_v28 = vadd.f32 %v1131_v43, %v594_v26 }
 0x1df   :  { %v602_v45 = vmul.f32 %v601_v44, %v597_v42 }
 0x1e0   :  { %v569_v48 = vpop.f32.mrf.mxu3 }
 0x1e1   :  { %v604_v49 = vsub.f32 %v569_v48, %v602_v45 }
 0x1e3   :  { %v605_v50 = vmul.f32 0.5, %v604_v49 }
 0x1e5   :  { %v606_v51 = vadd.f32 %v605_v50, %v602_v45 }
 0x1e7   :  { %vm607_vm2 = vcmp.ge.f32.partialorder %v606_v51, 0.5 }
 0x1e8   :  { %v841_v52 = vsel %vm607_vm2, 1.0, %v869_v12  ;;  %v571_v57 = vpop.f32.mrf.mxu3 }
 0x1e9   :  { %v610_v53 = vsub.f32 1.0, %v841_v52  ;;  %v612_v29 = vadd.f32 %v841_v52, %v603_v28 }
 0x1eb   :  { %v611_v54 = vmul.f32 %v610_v53, %v606_v51 }
 0x1ed   :  { %v613_v58 = vsub.f32 %v571_v57, %v611_v54 }
 0x1ef   :  { %v614_v60 = vmul.f32 0.5, %v613_v58 }
 0x1f1   :  { %v615_v61 = vadd.f32 %v614_v60, %v611_v54 }
 0x1f3   :  { %vm616_vm9 = vcmp.ge.f32.partialorder %v615_v61, 0.5 }
 0x1f4   :  { %v842_v62 = vsel %vm616_vm9, 1.0, %v869_v12 }
 0x1f5   :  { %v619_v63 = vsub.f32 1.0, %v842_v62  ;;  %v621_v34 = vadd.f32 %v842_v62, %v612_v29 }
 0x1f7   :  { %v620_v30 = vmul.f32 %v619_v63, %v615_v61 }
 0x1f8   :  { %v574_v2 = vpop.f32.mrf.mxu3 }
 0x1f9   :  { %v622_v3 = vsub.f32 %v574_v2, %v620_v30 }
 0x1fb   :  { %v623_v4 = vmul.f32 0.5, %v622_v3 }
 0x1fd   :  { %v624_v5 = vadd.f32 %v623_v4, %v620_v30 }
 0x1ff   :  { %vm625_vm10 = vcmp.ge.f32.partialorder %v624_v5, 0.5 }
 0x200   :  { %v843_v6 = vsel %vm625_vm10, 1.0, %v869_v12  ;;  %v576_v11 = vpop.f32.mrf.mxu3 }
 0x201   :  { %v628_v8 = vsub.f32 1.0, %v843_v6  ;;  %v630_v36 = vadd.f32 %v843_v6, %v621_v34 }
 0x203   :  { %v629_v10 = vmul.f32 %v628_v8, %v624_v5 }
 0x205   :  { %v631_v14 = vsub.f32 %v576_v11, %v629_v10 }
 0x207   :  { %v632_v16 = vmul.f32 0.5, %v631_v14 }
 0x209   :  { %v633_v17 = vadd.f32 %v632_v16, %v629_v10 }
 0x20b   :  { %vm634_vm11 = vcmp.ge.f32.partialorder %v633_v17, 0.5 }
 0x20c   :  { %v844_v18 = vsel %vm634_vm11, 1.0, %v869_v12 }
 0x20d   :  { %v637_v19 = vsub.f32 1.0, %v844_v18  ;;  %v639_v38 = vadd.f32 %v844_v18, %v630_v36 }
 0x20f   :  { %v638_v20 = vmul.f32 %v637_v19, %v633_v17 }
 0x210   :  { %v579_v21 = vpop.f32.mrf.mxu3 }
 0x211   :  { %v640_v22 = vsub.f32 %v579_v21, %v638_v20 }
 0x213   :  { %v641_v23 = vmul.f32 0.5, %v640_v22 }
 0x215   :  { %v642_v25 = vadd.f32 %v641_v23, %v638_v20 }
 0x217   :  { %vm643_vm12 = vcmp.ge.f32.partialorder %v642_v25, 0.5 }
 0x218   :  { %v845_v27 = vsel %vm643_vm12, 1.0, %v869_v12  ;;  %v581_v32 = vpop.f32.mrf.mxu3 }
 0x219   :  { %v646_v7 = vsub.f32 1.0, %v845_v27  ;;  %v648_v40 = vadd.f32 %v845_v27, %v639_v38 }
 0x21b   :  { %v647_v31 = vmul.f32 %v646_v7, %v642_v25 }
 0x21d   :  { %v649_v35 = vsub.f32 %v581_v32, %v647_v31 }
 0x21f   :  { %v650_v37 = vmul.f32 0.5, %v649_v35 }
 0x221   :  { %v651_v39 = vadd.f32 %v650_v37, %v647_v31 }
 0x223   :  { %vm652_vm13 = vcmp.ge.f32.partialorder %v651_v39, 0.5 }
 0x224   :  { %v846_v41 = vsel %vm652_vm13, 1.0, %v869_v12 }
 0x225   :  { %v655_v33 = vsub.f32 1.0, %v846_v41  ;;  %v657_v42 = vadd.f32 %v846_v41, %v648_v40 }
 0x227   :  { %v656_v44 = vmul.f32 %v655_v33, %v651_v39  ;;  %660 = vst.msk [vmem:[#allocation5] sm:$0xff] %vm38_vm5, %v657_v42  ;;  %848 = vmatmul.msk.f32.vlgmr.msrb.gmra.mxu0 %vm38_vm5, %v657_v42 }
 0x229   :  { %659 = vst.msk [vmem:[#allocation4] sm:$0xff] %vm38_vm5, %v656_v44 }
 0x2a4   :  { %v701_v43 = vpop.f32.mrf.mxu0 }
 0x2a5   :  { %v704_v45 = vmul.f32 0.125, %v701_v43 }
 0x2a7   :  { %706 = vst.msk [vmem:[%s1187_s7] sm:$0xff] %vm705_vm14, %v704_v45 }

</bundles_post_ra>
